<compile_context>
chip_gen: v6e
topology: v6e:2x2x1
jax: 0.10.0
libtpu: 0.0.40
codegen_flags: <defaults>
</compile_context>

<pallas_src>
import math
from functools import partial

import jax
import jax.numpy as jnp
import numpy as np
from jax.experimental import pallas as pl
from jax.experimental.pallas import tpu as pltpu

N_CORES = 2  # leading "parallel" grid axis: dual-TensorCore split on v7x, harmless elsewhere.


def _round_up(x, m):
    return ((x + m - 1) // m) * m


def _vmem_limit_bytes():
    """Chip-adaptive scoped-VMEM limit (v5e/v6e: 128 MiB physical, v7x: 64 MiB per TC)."""
    try:
        phys = int(pltpu.get_tpu_info().vmem_capacity_bytes)
    except Exception:
        phys = 64 * 1024 * 1024  # conservative fallback (v7x per-TensorCore VMEM)
    return min((phys * 3) // 4, 96 * 1024 * 1024)


def _derive_dims(h, w, k, p, th, n_off):
    wp = w + 2 * p                              # padded row pitch
    thp = th + 2 * p                            # row-block height incl. halo
    cb_raw = th * wp                            # real flattened b-row-block length
    cb = _round_up(cb_raw, 128)                 # lane/MXU-aligned contraction length
    pad_c = cb - cb_raw
    ca = _round_up(thp * wp + 2 * p + pad_c, 128)   # flat a block + wrap/align slack (all zeros)
    sk_pad = _round_up(n_off * k, 128)          # lane-dense packed-output width
    return wp, thp, cb_raw, cb, ca, sk_pad


def _pick_row_block(h, w, k, p, n_off, budget_bytes):
    """Largest divisor of H whose full (double-buffered) per-step VMEM footprint fits."""
    for th in sorted((d for d in range(1, h + 1) if h % d == 0), reverse=True):
        wp, thp, cb_raw, cb, ca, sk_pad = _derive_dims(h, w, k, p, th, n_off)
        a_bytes = 2 * k * ca * 2                # double-buffered bf16 a block
        b_bytes = 2 * k * cb * 2                # double-buffered bf16 b block
        wstack_bytes = sk_pad * cb * 2          # packed-RHS scratch (single copy)
        p_bytes = 2 * k * sk_pad * 4            # resident accumulator output block
        if a_bytes + b_bytes + wstack_bytes + p_bytes <= budget_bytes:
            return th
    return 1


def _pui_kernel(a_ref, b_ref, p_ref, ne_ref, wstack_ref, *,
                s1, wp, cb, cb_raw, k, center_off):
    # a_ref      : (1, K, Ca)   bf16  flat zero-padded x_out row-block (halo + slack)
    # b_ref      : (1, K, Cb)   bf16  flat x_tf_out row-block (zeros in row/tail pad)
    # p_ref      : (1, K, SKp)  f32   per-core packed conv accumulator (resident across t)
    # ne_ref     : (1, 1, 1)    f32   per-core entropy partial sum
    # wstack_ref : (SKp, Cb)    bf16  stacked offset windows (packed RHS)
    t = pl.program_id(1)

    @pl.when(t == 0)
    def _init():
        p_ref[...] = jnp.zeros_like(p_ref)
        ne_ref[...] = jnp.zeros_like(ne_ref)
        wstack_ref[...] = jnp.zeros_like(wstack_ref)   # keeps rows S*K..SKp-1 at exact zero

    # --- stack all (2p+1)^2 lane-shifted x_out windows (static offsets; vld/vst overlap MXU) ---
    for dy in range(s1):
        for dx in range(s1):
            s = dy * s1 + dx
            wstack_ref[pl.ds(s * k, k), :] = a_ref[0, :, pl.ds(dy * wp + dx, cb)]

    # --- one wide MXU matmul covering every offset: (K, Cb) x (Cb, SKp) -> (K, SKp) f32 ---
    g = jax.lax.dot_general(
        b_ref[0], wstack_ref[...], (((1,), (1,)), ((), ())),
        preferred_element_type=jnp.float32)
    p_ref[0] = p_ref[0] + g                            # single lane-dense accumulate per step

    # --- entropy partial sum from the centre (dy=dx=p) window, masked to real pixels ---
    center = a_ref[0, :, pl.ds(center_off, cb)].astype(jnp.float32)   # (K, Cb)
    pm = jnp.mean(center, axis=0, keepdims=True)                      # (1, Cb)
    col = jax.lax.broadcasted_iota(jnp.int32, pm.shape, 1)
    safe = jnp.where(pm > 0.0, pm, 1.0)        # pm==0 (pad / zero prob) contributes exactly 0
    contrib = jnp.where(col < cb_raw, pm * jnp.log(safe), 0.0)
    ne_ref[0] = ne_ref[0] + jnp.sum(contrib, axis=1, keepdims=True)


@partial(jax.jit, static_argnames=("lamda", "padding", "row_block"))
def pui_seg_loss(x_out, x_tf_out, lamda=2.0, padding=3, row_block=None):
    """Pallas implementation of PUISegLoss.forward. Inputs are NCHW (N, K, H, W)."""
    assert x_out.shape == x_tf_out.shape, "Inputs are required to have same shape"
    n, k, h, w = x_out.shape
    p = int(padding)
    s1 = 2 * p + 1
    n_off = s1 * s1
    length = n * h * w

    vmem_limit = _vmem_limit_bytes()
    budget = (vmem_limit * 2) // 3                      # leave headroom for compiler temporaries
    th = row_block if row_block is not None else _pick_row_block(h, w, k, p, n_off, budget)
    assert h % th == 0
    wp, thp, cb_raw, cb, ca, sk_pad = _derive_dims(h, w, k, p, th, n_off)
    n_hblk = h // th
    t_tiles = n * n_hblk
    t_per_core = -(-t_tiles // N_CORES)
    t_padded = N_CORES * t_per_core                     # zero tiles contribute 0 to P and ne

    # (N,K,H,W) -> (K,N,H,W); bf16 matmul operands (f32 accumulation stays in-kernel).
    xo = jnp.transpose(x_out, (1, 0, 2, 3)).astype(jnp.bfloat16)
    xt = jnp.transpose(x_tf_out, (1, 0, 2, 3)).astype(jnp.bfloat16)

    # a: zero-padded x_out split into overlapping (halo) row-blocks, flattened row-major.
    xo_pad = jnp.pad(xo, ((0, 0), (0, 0), (p, p), (p, p)))            # (K, N, H+2p, Wp)
    halos = [xo_pad[:, :, i * th:i * th + thp, :] for i in range(n_hblk)]
    ah = jnp.stack(halos, axis=2)                                     # (K, N, n_hblk, THp, Wp)
    ah = jnp.transpose(ah, (1, 2, 0, 3, 4)).reshape(t_tiles, k, thp * wp)
    ah = jnp.pad(ah, ((0, t_padded - t_tiles), (0, 0), (0, ca - thp * wp)))

    # b: x_tf_out row-blocks, rows right-padded by 2p zeros, flattened, tail aligned to Cb.
    bt = xt.reshape(k, n, n_hblk, th, w)
    bt = jnp.transpose(bt, (1, 2, 0, 3, 4))                           # (N, n_hblk, K, TH, W)
    bt = jnp.pad(bt, ((0, 0), (0, 0), (0, 0), (0, 0), (0, 2 * p)))    # W -> Wp
    bt = bt.reshape(t_tiles, k, cb_raw)
    bt = jnp.pad(bt, ((0, t_padded - t_tiles), (0, 0), (0, cb - cb_raw)))

    kernel = partial(_pui_kernel, s1=s1, wp=wp, cb=cb, cb_raw=cb_raw,
                     k=k, center_off=p * wp + p)

    grid_spec = pltpu.PrefetchScalarGridSpec(
        num_scalar_prefetch=0,
        grid=(N_CORES, t_per_core),
        in_specs=[
            pl.BlockSpec((1, k, ca), lambda c, t: (c * t_per_core + t, 0, 0)),
            pl.BlockSpec((1, k, cb), lambda c, t: (c * t_per_core + t, 0, 0)),
        ],
        out_specs=[
            pl.BlockSpec((1, k, sk_pad), lambda c, t: (c, 0, 0)),     # per-core resident P
            pl.BlockSpec((1, 1, 1), lambda c, t: (c, 0, 0)),          # per-core resident ne
        ],
        scratch_shapes=[pltpu.VMEM((sk_pad, cb), jnp.bfloat16)],      # packed-RHS window stack
    )

    cost = pl.CostEstimate(
        flops=2 * t_padded * k * sk_pad * cb,
        transcendentals=length,
        bytes_accessed=int(ah.size) * 2 + int(bt.size) * 2 + N_CORES * (k * sk_pad + 1) * 4,
    )

    p_part, ne_part = pl.pallas_call(
        kernel,
        out_shape=(jax.ShapeDtypeStruct((N_CORES, k, sk_pad), jnp.float32),
                   jax.ShapeDtypeStruct((N_CORES, 1, 1), jnp.float32)),
        grid_spec=grid_spec,
        compiler_params=pltpu.CompilerParams(
            dimension_semantics=("parallel", "arbitrary"),
            vmem_limit_bytes=vmem_limit,
        ),
        cost_estimate=cost,
    )(ah, bt)

    # --- tiny O(S*K*K) finalize in plain JAX, mirroring the reference exactly.  Our packed P
    #     is the per-offset transpose of the reference conv, which is invariant under the
    #     global min, per-offset normalisation, symmetrisation and diagonal KL used below. ---
    P = jnp.sum(p_part, axis=0)[:, : n_off * k]                       # (K, S*K)
    pij = jnp.transpose(P.reshape(k, n_off, k), (1, 0, 2))            # (S, K, K)
    pij = pij - jnp.min(pij) + 1e-16
    pij = pij / jnp.sum(pij, axis=(1, 2), keepdims=True)
    pij = (pij + jnp.transpose(pij, (0, 2, 1))) * 0.5
    pm_joint = jnp.mean(pij, axis=0)                                  # (K, K)
    eye = jnp.eye(k, dtype=jnp.float32)
    loss_ce = jnp.mean(-eye * jnp.log(pm_joint + 1e-16))
    loss_ne = math.log(length) + jnp.sum(ne_part)
    return loss_ce + lamda * loss_ne


def pui_seg_loss_ref(x_out, x_tf_out, lamda=2.0, padding=3):
    """Pure-JAX reference mirroring the PyTorch module exactly (for validation)."""
    n, k, h, w = x_out.shape
    xo = jnp.transpose(x_out, (1, 0, 2, 3)).astype(jnp.float32)
    xt = jnp.transpose(x_tf_out, (1, 0, 2, 3)).astype(jnp.float32)
    p_i_j = jax.lax.conv_general_dilated(
        xo, xt, window_strides=(1, 1),
        padding=[(padding, padding), (padding, padding)],
        dimension_numbers=("NCHW", "OIHW", "NCHW"),
        precision=jax.lax.Precision.HIGHEST,
    )                                                                 # (K, K, 2p+1, 2p+1)
    p_i_j = p_i_j - jnp.min(p_i_j) + 1e-16
    p_i_j = jnp.transpose(p_i_j, (2, 3, 0, 1))
    p_i_j = p_i_j / jnp.sum(p_i_j, axis=(2, 3), keepdims=True)
    p_i_j = (p_i_j + jnp.transpose(p_i_j, (0, 1, 3, 2))) / 2.0
    p_i_j = jnp.mean(p_i_j, axis=(0, 1))
    diag = jnp.eye(k, dtype=jnp.float32)
    loss_ce = jnp.mean(-diag * jnp.log(p_i_j + 1e-16))
    pvec = jnp.mean(xo, axis=0).reshape(-1)
    loss_ne = math.log(pvec.shape[0]) + jnp.sum(pvec * jnp.log(pvec))
    return loss_ce + lamda * loss_ne


if __name__ == "__main__":
    key = jax.random.PRNGKey(0)
    k1, k2 = jax.random.split(key)
    N, K, H, W = 2, 4, 16, 16
    # Assignment probabilities (softmax over the class/channel axis), NCHW.
    x_out = jax.nn.softmax(jax.random.normal(k1, (N, K, H, W), jnp.float32), axis=1)
    x_tf_out = jax.nn.softmax(jax.random.normal(k2, (N, K, H, W), jnp.float32), axis=1)

    loss = pui_seg_loss(x_out, x_tf_out, lamda=2.0, padding=3)
    jax.block_until_ready(loss)

    ref = pui_seg_loss_ref(x_out, x_tf_out, lamda=2.0, padding=3)
    np.testing.assert_allclose(np.asarray(loss), np.asarray(ref), rtol=5e-3, atol=5e-3)
    print("KERNEL_OK")
</pallas_src>

<mosaic_0001>
module attributes {stable_mosaic.version = 11 : i64} {
  func.func @_pui_kernel(%arg0: i32, %arg1: i32, %arg2: memref<1x4x640xbf16, #tpu.memory_space<vmem>>, %arg3: memref<1x4x384xbf16, #tpu.memory_space<vmem>>, %arg4: memref<1x4x256xf32, #tpu.memory_space<vmem>>, %arg5: memref<1x1x1xf32, #tpu.memory_space<vmem>>, %arg6: memref<256x384xbf16, #tpu.memory_space<vmem>>) attributes {dimension_semantics = [#tpu.dimension_semantics<parallel>, #tpu.dimension_semantics<arbitrary>], iteration_bounds = array<i64: 2, 1>, scalar_prefetch = 0 : i64, scratch_operands = 1 : i64, tpu.core_type = #tpu.core_type<tc>, window_params = [{transform_indices = @transform_0, window_bounds = array<i64: 1, 4, 640>}, {transform_indices = @transform_1, window_bounds = array<i64: 1, 4, 384>}, {transform_indices = @transform_2, window_bounds = array<i64: 1, 4, 256>}, {transform_indices = @transform_3, window_bounds = array<i64: 1, 1, 1>}]} {
    %c0_i32 = arith.constant 0 : i32
    %0 = arith.cmpi eq, %arg1, %c0_i32 : i32
    %1 = arith.extui %0 : i1 to i32
    %c0_i32_0 = arith.constant 0 : i32
    %2 = arith.cmpi ne, %1, %c0_i32_0 : i32
    scf.if %2 {
      %cst_188 = arith.constant 0.000000e+00 : f32
      %186 = vector.broadcast %cst_188 : f32 to vector<1x4x256xf32>
      %c0_189 = arith.constant 0 : index
      %c0_190 = arith.constant 0 : index
      %c0_191 = arith.constant 0 : index
      %187 = vector.load %arg4[%c0_189, %c0_190, %c0_191] : memref<1x4x256xf32, #tpu.memory_space<vmem>>, vector<1x4x256xf32>
      tpu.vector_store %arg4[%c0_189, %c0_190, %c0_191], %186 {strides = array<i32>} : memref<1x4x256xf32, #tpu.memory_space<vmem>>, vector<1x4x256xf32>,
      %cst_192 = arith.constant 0.000000e+00 : f32
      %188 = vector.broadcast %cst_192 : f32 to vector<1x1x1xf32>
      %c0_193 = arith.constant 0 : index
      %c0_194 = arith.constant 0 : index
      %c0_195 = arith.constant 0 : index
      %189 = vector.load %arg5[%c0_193, %c0_194, %c0_195] : memref<1x1x1xf32, #tpu.memory_space<vmem>>, vector<1x1x1xf32>
      tpu.vector_store %arg5[%c0_193, %c0_194, %c0_195], %188 {strides = array<i32>} : memref<1x1x1xf32, #tpu.memory_space<vmem>>, vector<1x1x1xf32>,
      %cst_196 = arith.constant 0.000000e+00 : bf16
      %190 = vector.broadcast %cst_196 : bf16 to vector<256x384xbf16>
      %c0_197 = arith.constant 0 : index
      %c0_198 = arith.constant 0 : index
      %191 = vector.load %arg6[%c0_197, %c0_198] : memref<256x384xbf16, #tpu.memory_space<vmem>>, vector<256x384xbf16>
      tpu.vector_store %arg6[%c0_197, %c0_198], %190 {strides = array<i32>} : memref<256x384xbf16, #tpu.memory_space<vmem>>, vector<256x384xbf16>,
    } else {
    }
    %c0 = arith.constant 0 : index
    %c0_1 = arith.constant 0 : index
    %c0_2 = arith.constant 0 : index
    %3 = vector.load %arg2[%c0, %c0_1, %c0_2] : memref<1x4x640xbf16, #tpu.memory_space<vmem>>, vector<1x4x384xbf16>
    %4 = vector.shape_cast %3 : vector<1x4x384xbf16> to vector<4x384xbf16>
    %c0_3 = arith.constant 0 : index
    %c0_4 = arith.constant 0 : index
    %5 = vector.load %arg6[%c0_3, %c0_4] : memref<256x384xbf16, #tpu.memory_space<vmem>>, vector<4x384xbf16>
    tpu.vector_store %arg6[%c0_3, %c0_4], %4 {strides = array<i32>} : memref<256x384xbf16, #tpu.memory_space<vmem>>, vector<4x384xbf16>,
    %c0_5 = arith.constant 0 : index
    %c0_6 = arith.constant 0 : index
    %c1 = arith.constant 1 : index
    %6 = vector.load %arg2[%c0_5, %c0_6, %c1] : memref<1x4x640xbf16, #tpu.memory_space<vmem>>, vector<1x4x384xbf16>
    %7 = vector.shape_cast %6 : vector<1x4x384xbf16> to vector<4x384xbf16>
    %c4 = arith.constant 4 : index
    %c0_7 = arith.constant 0 : index
    %8 = vector.load %arg6[%c4, %c0_7] : memref<256x384xbf16, #tpu.memory_space<vmem>>, vector<4x384xbf16>
    tpu.vector_store %arg6[%c4, %c0_7], %7 {strides = array<i32>} : memref<256x384xbf16, #tpu.memory_space<vmem>>, vector<4x384xbf16>,
    %c0_8 = arith.constant 0 : index
    %c0_9 = arith.constant 0 : index
    %c2 = arith.constant 2 : index
    %9 = vector.load %arg2[%c0_8, %c0_9, %c2] : memref<1x4x640xbf16, #tpu.memory_space<vmem>>, vector<1x4x384xbf16>
    %10 = vector.shape_cast %9 : vector<1x4x384xbf16> to vector<4x384xbf16>
    %c8 = arith.constant 8 : index
    %c0_10 = arith.constant 0 : index
    %11 = vector.load %arg6[%c8, %c0_10] : memref<256x384xbf16, #tpu.memory_space<vmem>>, vector<4x384xbf16>
    tpu.vector_store %arg6[%c8, %c0_10], %10 {strides = array<i32>} : memref<256x384xbf16, #tpu.memory_space<vmem>>, vector<4x384xbf16>,
    %c0_11 = arith.constant 0 : index
    %c0_12 = arith.constant 0 : index
    %c3 = arith.constant 3 : index
    %12 = vector.load %arg2[%c0_11, %c0_12, %c3] : memref<1x4x640xbf16, #tpu.memory_space<vmem>>, vector<1x4x384xbf16>
    %13 = vector.shape_cast %12 : vector<1x4x384xbf16> to vector<4x384xbf16>
    %c12 = arith.constant 12 : index
    %c0_13 = arith.constant 0 : index
    %14 = vector.load %arg6[%c12, %c0_13] : memref<256x384xbf16, #tpu.memory_space<vmem>>, vector<4x384xbf16>
    tpu.vector_store %arg6[%c12, %c0_13], %13 {strides = array<i32>} : memref<256x384xbf16, #tpu.memory_space<vmem>>, vector<4x384xbf16>,
    %c0_14 = arith.constant 0 : index
    %c0_15 = arith.constant 0 : index
    %c4_16 = arith.constant 4 : index
    %15 = vector.load %arg2[%c0_14, %c0_15, %c4_16] : memref<1x4x640xbf16, #tpu.memory_space<vmem>>, vector<1x4x384xbf16>
    %16 = vector.shape_cast %15 : vector<1x4x384xbf16> to vector<4x384xbf16>
    %c16 = arith.constant 16 : index
    %c0_17 = arith.constant 0 : index
    %17 = vector.load %arg6[%c16, %c0_17] : memref<256x384xbf16, #tpu.memory_space<vmem>>, vector<4x384xbf16>
    tpu.vector_store %arg6[%c16, %c0_17], %16 {strides = array<i32>} : memref<256x384xbf16, #tpu.memory_space<vmem>>, vector<4x384xbf16>,
    %c0_18 = arith.constant 0 : index
    %c0_19 = arith.constant 0 : index
    %c5 = arith.constant 5 : index
    %18 = vector.load %arg2[%c0_18, %c0_19, %c5] : memref<1x4x640xbf16, #tpu.memory_space<vmem>>, vector<1x4x384xbf16>
    %19 = vector.shape_cast %18 : vector<1x4x384xbf16> to vector<4x384xbf16>
    %c20 = arith.constant 20 : index
    %c0_20 = arith.constant 0 : index
    %20 = vector.load %arg6[%c20, %c0_20] : memref<256x384xbf16, #tpu.memory_space<vmem>>, vector<4x384xbf16>
    tpu.vector_store %arg6[%c20, %c0_20], %19 {strides = array<i32>} : memref<256x384xbf16, #tpu.memory_space<vmem>>, vector<4x384xbf16>,
    %c0_21 = arith.constant 0 : index
    %c0_22 = arith.constant 0 : index
    %c6 = arith.constant 6 : index
    %21 = vector.load %arg2[%c0_21, %c0_22, %c6] : memref<1x4x640xbf16, #tpu.memory_space<vmem>>, vector<1x4x384xbf16>
    %22 = vector.shape_cast %21 : vector<1x4x384xbf16> to vector<4x384xbf16>
    %c24 = arith.constant 24 : index
    %c0_23 = arith.constant 0 : index
    %23 = vector.load %arg6[%c24, %c0_23] : memref<256x384xbf16, #tpu.memory_space<vmem>>, vector<4x384xbf16>
    tpu.vector_store %arg6[%c24, %c0_23], %22 {strides = array<i32>} : memref<256x384xbf16, #tpu.memory_space<vmem>>, vector<4x384xbf16>,
    %c0_24 = arith.constant 0 : index
    %c0_25 = arith.constant 0 : index
    %c22 = arith.constant 22 : index
    %24 = vector.load %arg2[%c0_24, %c0_25, %c22] : memref<1x4x640xbf16, #tpu.memory_space<vmem>>, vector<1x4x384xbf16>
    %25 = vector.shape_cast %24 : vector<1x4x384xbf16> to vector<4x384xbf16>
    %c28 = arith.constant 28 : index
    %c0_26 = arith.constant 0 : index
    %26 = vector.load %arg6[%c28, %c0_26] : memref<256x384xbf16, #tpu.memory_space<vmem>>, vector<4x384xbf16>
    tpu.vector_store %arg6[%c28, %c0_26], %25 {strides = array<i32>} : memref<256x384xbf16, #tpu.memory_space<vmem>>, vector<4x384xbf16>,
    %c0_27 = arith.constant 0 : index
    %c0_28 = arith.constant 0 : index
    %c23 = arith.constant 23 : index
    %27 = vector.load %arg2[%c0_27, %c0_28, %c23] : memref<1x4x640xbf16, #tpu.memory_space<vmem>>, vector<1x4x384xbf16>
    %28 = vector.shape_cast %27 : vector<1x4x384xbf16> to vector<4x384xbf16>
    %c32 = arith.constant 32 : index
    %c0_29 = arith.constant 0 : index
    %29 = vector.load %arg6[%c32, %c0_29] : memref<256x384xbf16, #tpu.memory_space<vmem>>, vector<4x384xbf16>
    tpu.vector_store %arg6[%c32, %c0_29], %28 {strides = array<i32>} : memref<256x384xbf16, #tpu.memory_space<vmem>>, vector<4x384xbf16>,
    %c0_30 = arith.constant 0 : index
    %c0_31 = arith.constant 0 : index
    %c24_32 = arith.constant 24 : index
    %30 = vector.load %arg2[%c0_30, %c0_31, %c24_32] : memref<1x4x640xbf16, #tpu.memory_space<vmem>>, vector<1x4x384xbf16>
    %31 = vector.shape_cast %30 : vector<1x4x384xbf16> to vector<4x384xbf16>
    %c36 = arith.constant 36 : index
    %c0_33 = arith.constant 0 : index
    %32 = vector.load %arg6[%c36, %c0_33] : memref<256x384xbf16, #tpu.memory_space<vmem>>, vector<4x384xbf16>
    tpu.vector_store %arg6[%c36, %c0_33], %31 {strides = array<i32>} : memref<256x384xbf16, #tpu.memory_space<vmem>>, vector<4x384xbf16>,
    %c0_34 = arith.constant 0 : index
    %c0_35 = arith.constant 0 : index
    %c25 = arith.constant 25 : index
    %33 = vector.load %arg2[%c0_34, %c0_35, %c25] : memref<1x4x640xbf16, #tpu.memory_space<vmem>>, vector<1x4x384xbf16>
    %34 = vector.shape_cast %33 : vector<1x4x384xbf16> to vector<4x384xbf16>
    %c40 = arith.constant 40 : index
    %c0_36 = arith.constant 0 : index
    %35 = vector.load %arg6[%c40, %c0_36] : memref<256x384xbf16, #tpu.memory_space<vmem>>, vector<4x384xbf16>
    tpu.vector_store %arg6[%c40, %c0_36], %34 {strides = array<i32>} : memref<256x384xbf16, #tpu.memory_space<vmem>>, vector<4x384xbf16>,
    %c0_37 = arith.constant 0 : index
    %c0_38 = arith.constant 0 : index
    %c26 = arith.constant 26 : index
    %36 = vector.load %arg2[%c0_37, %c0_38, %c26] : memref<1x4x640xbf16, #tpu.memory_space<vmem>>, vector<1x4x384xbf16>
    %37 = vector.shape_cast %36 : vector<1x4x384xbf16> to vector<4x384xbf16>
    %c44 = arith.constant 44 : index
    %c0_39 = arith.constant 0 : index
    %38 = vector.load %arg6[%c44, %c0_39] : memref<256x384xbf16, #tpu.memory_space<vmem>>, vector<4x384xbf16>
    tpu.vector_store %arg6[%c44, %c0_39], %37 {strides = array<i32>} : memref<256x384xbf16, #tpu.memory_space<vmem>>, vector<4x384xbf16>,
    %c0_40 = arith.constant 0 : index
    %c0_41 = arith.constant 0 : index
    %c27 = arith.constant 27 : index
    %39 = vector.load %arg2[%c0_40, %c0_41, %c27] : memref<1x4x640xbf16, #tpu.memory_space<vmem>>, vector<1x4x384xbf16>
    %40 = vector.shape_cast %39 : vector<1x4x384xbf16> to vector<4x384xbf16>
    %c48 = arith.constant 48 : index
    %c0_42 = arith.constant 0 : index
    %41 = vector.load %arg6[%c48, %c0_42] : memref<256x384xbf16, #tpu.memory_space<vmem>>, vector<4x384xbf16>
    tpu.vector_store %arg6[%c48, %c0_42], %40 {strides = array<i32>} : memref<256x384xbf16, #tpu.memory_space<vmem>>, vector<4x384xbf16>,
    %c0_43 = arith.constant 0 : index
    %c0_44 = arith.constant 0 : index
    %c28_45 = arith.constant 28 : index
    %42 = vector.load %arg2[%c0_43, %c0_44, %c28_45] : memref<1x4x640xbf16, #tpu.memory_space<vmem>>, vector<1x4x384xbf16>
    %43 = vector.shape_cast %42 : vector<1x4x384xbf16> to vector<4x384xbf16>
    %c52 = arith.constant 52 : index
    %c0_46 = arith.constant 0 : index
    %44 = vector.load %arg6[%c52, %c0_46] : memref<256x384xbf16, #tpu.memory_space<vmem>>, vector<4x384xbf16>
    tpu.vector_store %arg6[%c52, %c0_46], %43 {strides = array<i32>} : memref<256x384xbf16, #tpu.memory_space<vmem>>, vector<4x384xbf16>,
    %c0_47 = arith.constant 0 : index
    %c0_48 = arith.constant 0 : index
    %c44_49 = arith.constant 44 : index
    %45 = vector.load %arg2[%c0_47, %c0_48, %c44_49] : memref<1x4x640xbf16, #tpu.memory_space<vmem>>, vector<1x4x384xbf16>
    %46 = vector.shape_cast %45 : vector<1x4x384xbf16> to vector<4x384xbf16>
    %c56 = arith.constant 56 : index
    %c0_50 = arith.constant 0 : index
    %47 = vector.load %arg6[%c56, %c0_50] : memref<256x384xbf16, #tpu.memory_space<vmem>>, vector<4x384xbf16>
    tpu.vector_store %arg6[%c56, %c0_50], %46 {strides = array<i32>} : memref<256x384xbf16, #tpu.memory_space<vmem>>, vector<4x384xbf16>,
    %c0_51 = arith.constant 0 : index
    %c0_52 = arith.constant 0 : index
    %c45 = arith.constant 45 : index
    %48 = vector.load %arg2[%c0_51, %c0_52, %c45] : memref<1x4x640xbf16, #tpu.memory_space<vmem>>, vector<1x4x384xbf16>
    %49 = vector.shape_cast %48 : vector<1x4x384xbf16> to vector<4x384xbf16>
    %c60 = arith.constant 60 : index
    %c0_53 = arith.constant 0 : index
    %50 = vector.load %arg6[%c60, %c0_53] : memref<256x384xbf16, #tpu.memory_space<vmem>>, vector<4x384xbf16>
    tpu.vector_store %arg6[%c60, %c0_53], %49 {strides = array<i32>} : memref<256x384xbf16, #tpu.memory_space<vmem>>, vector<4x384xbf16>,
    %c0_54 = arith.constant 0 : index
    %c0_55 = arith.constant 0 : index
    %c46 = arith.constant 46 : index
    %51 = vector.load %arg2[%c0_54, %c0_55, %c46] : memref<1x4x640xbf16, #tpu.memory_space<vmem>>, vector<1x4x384xbf16>
    %52 = vector.shape_cast %51 : vector<1x4x384xbf16> to vector<4x384xbf16>
    %c64 = arith.constant 64 : index
    %c0_56 = arith.constant 0 : index
    %53 = vector.load %arg6[%c64, %c0_56] : memref<256x384xbf16, #tpu.memory_space<vmem>>, vector<4x384xbf16>
    tpu.vector_store %arg6[%c64, %c0_56], %52 {strides = array<i32>} : memref<256x384xbf16, #tpu.memory_space<vmem>>, vector<4x384xbf16>,
    %c0_57 = arith.constant 0 : index
    %c0_58 = arith.constant 0 : index
    %c47 = arith.constant 47 : index
    %54 = vector.load %arg2[%c0_57, %c0_58, %c47] : memref<1x4x640xbf16, #tpu.memory_space<vmem>>, vector<1x4x384xbf16>
    %55 = vector.shape_cast %54 : vector<1x4x384xbf16> to vector<4x384xbf16>
    %c68 = arith.constant 68 : index
    %c0_59 = arith.constant 0 : index
    %56 = vector.load %arg6[%c68, %c0_59] : memref<256x384xbf16, #tpu.memory_space<vmem>>, vector<4x384xbf16>
    tpu.vector_store %arg6[%c68, %c0_59], %55 {strides = array<i32>} : memref<256x384xbf16, #tpu.memory_space<vmem>>, vector<4x384xbf16>,
    %c0_60 = arith.constant 0 : index
    %c0_61 = arith.constant 0 : index
    %c48_62 = arith.constant 48 : index
    %57 = vector.load %arg2[%c0_60, %c0_61, %c48_62] : memref<1x4x640xbf16, #tpu.memory_space<vmem>>, vector<1x4x384xbf16>
    %58 = vector.shape_cast %57 : vector<1x4x384xbf16> to vector<4x384xbf16>
    %c72 = arith.constant 72 : index
    %c0_63 = arith.constant 0 : index
    %59 = vector.load %arg6[%c72, %c0_63] : memref<256x384xbf16, #tpu.memory_space<vmem>>, vector<4x384xbf16>
    tpu.vector_store %arg6[%c72, %c0_63], %58 {strides = array<i32>} : memref<256x384xbf16, #tpu.memory_space<vmem>>, vector<4x384xbf16>,
    %c0_64 = arith.constant 0 : index
    %c0_65 = arith.constant 0 : index
    %c49 = arith.constant 49 : index
    %60 = vector.load %arg2[%c0_64, %c0_65, %c49] : memref<1x4x640xbf16, #tpu.memory_space<vmem>>, vector<1x4x384xbf16>
    %61 = vector.shape_cast %60 : vector<1x4x384xbf16> to vector<4x384xbf16>
    %c76 = arith.constant 76 : index
    %c0_66 = arith.constant 0 : index
    %62 = vector.load %arg6[%c76, %c0_66] : memref<256x384xbf16, #tpu.memory_space<vmem>>, vector<4x384xbf16>
    tpu.vector_store %arg6[%c76, %c0_66], %61 {strides = array<i32>} : memref<256x384xbf16, #tpu.memory_space<vmem>>, vector<4x384xbf16>,
    %c0_67 = arith.constant 0 : index
    %c0_68 = arith.constant 0 : index
    %c50 = arith.constant 50 : index
    %63 = vector.load %arg2[%c0_67, %c0_68, %c50] : memref<1x4x640xbf16, #tpu.memory_space<vmem>>, vector<1x4x384xbf16>
    %64 = vector.shape_cast %63 : vector<1x4x384xbf16> to vector<4x384xbf16>
    %c80 = arith.constant 80 : index
    %c0_69 = arith.constant 0 : index
    %65 = vector.load %arg6[%c80, %c0_69] : memref<256x384xbf16, #tpu.memory_space<vmem>>, vector<4x384xbf16>
    tpu.vector_store %arg6[%c80, %c0_69], %64 {strides = array<i32>} : memref<256x384xbf16, #tpu.memory_space<vmem>>, vector<4x384xbf16>,
    %c0_70 = arith.constant 0 : index
    %c0_71 = arith.constant 0 : index
    %c66 = arith.constant 66 : index
    %66 = vector.load %arg2[%c0_70, %c0_71, %c66] : memref<1x4x640xbf16, #tpu.memory_space<vmem>>, vector<1x4x384xbf16>
    %67 = vector.shape_cast %66 : vector<1x4x384xbf16> to vector<4x384xbf16>
    %c84 = arith.constant 84 : index
    %c0_72 = arith.constant 0 : index
    %68 = vector.load %arg6[%c84, %c0_72] : memref<256x384xbf16, #tpu.memory_space<vmem>>, vector<4x384xbf16>
    tpu.vector_store %arg6[%c84, %c0_72], %67 {strides = array<i32>} : memref<256x384xbf16, #tpu.memory_space<vmem>>, vector<4x384xbf16>,
    %c0_73 = arith.constant 0 : index
    %c0_74 = arith.constant 0 : index
    %c67 = arith.constant 67 : index
    %69 = vector.load %arg2[%c0_73, %c0_74, %c67] : memref<1x4x640xbf16, #tpu.memory_space<vmem>>, vector<1x4x384xbf16>
    %70 = vector.shape_cast %69 : vector<1x4x384xbf16> to vector<4x384xbf16>
    %c88 = arith.constant 88 : index
    %c0_75 = arith.constant 0 : index
    %71 = vector.load %arg6[%c88, %c0_75] : memref<256x384xbf16, #tpu.memory_space<vmem>>, vector<4x384xbf16>
    tpu.vector_store %arg6[%c88, %c0_75], %70 {strides = array<i32>} : memref<256x384xbf16, #tpu.memory_space<vmem>>, vector<4x384xbf16>,
    %c0_76 = arith.constant 0 : index
    %c0_77 = arith.constant 0 : index
    %c68_78 = arith.constant 68 : index
    %72 = vector.load %arg2[%c0_76, %c0_77, %c68_78] : memref<1x4x640xbf16, #tpu.memory_space<vmem>>, vector<1x4x384xbf16>
    %73 = vector.shape_cast %72 : vector<1x4x384xbf16> to vector<4x384xbf16>
    %c92 = arith.constant 92 : index
    %c0_79 = arith.constant 0 : index
    %74 = vector.load %arg6[%c92, %c0_79] : memref<256x384xbf16, #tpu.memory_space<vmem>>, vector<4x384xbf16>
    tpu.vector_store %arg6[%c92, %c0_79], %73 {strides = array<i32>} : memref<256x384xbf16, #tpu.memory_space<vmem>>, vector<4x384xbf16>,
    %c0_80 = arith.constant 0 : index
    %c0_81 = arith.constant 0 : index
    %c69 = arith.constant 69 : index
    %75 = vector.load %arg2[%c0_80, %c0_81, %c69] : memref<1x4x640xbf16, #tpu.memory_space<vmem>>, vector<1x4x384xbf16>
    %76 = vector.shape_cast %75 : vector<1x4x384xbf16> to vector<4x384xbf16>
    %c96 = arith.constant 96 : index
    %c0_82 = arith.constant 0 : index
    %77 = vector.load %arg6[%c96, %c0_82] : memref<256x384xbf16, #tpu.memory_space<vmem>>, vector<4x384xbf16>
    tpu.vector_store %arg6[%c96, %c0_82], %76 {strides = array<i32>} : memref<256x384xbf16, #tpu.memory_space<vmem>>, vector<4x384xbf16>,
    %c0_83 = arith.constant 0 : index
    %c0_84 = arith.constant 0 : index
    %c70 = arith.constant 70 : index
    %78 = vector.load %arg2[%c0_83, %c0_84, %c70] : memref<1x4x640xbf16, #tpu.memory_space<vmem>>, vector<1x4x384xbf16>
    %79 = vector.shape_cast %78 : vector<1x4x384xbf16> to vector<4x384xbf16>
    %c100 = arith.constant 100 : index
    %c0_85 = arith.constant 0 : index
    %80 = vector.load %arg6[%c100, %c0_85] : memref<256x384xbf16, #tpu.memory_space<vmem>>, vector<4x384xbf16>
    tpu.vector_store %arg6[%c100, %c0_85], %79 {strides = array<i32>} : memref<256x384xbf16, #tpu.memory_space<vmem>>, vector<4x384xbf16>,
    %c0_86 = arith.constant 0 : index
    %c0_87 = arith.constant 0 : index
    %c71 = arith.constant 71 : index
    %81 = vector.load %arg2[%c0_86, %c0_87, %c71] : memref<1x4x640xbf16, #tpu.memory_space<vmem>>, vector<1x4x384xbf16>
    %82 = vector.shape_cast %81 : vector<1x4x384xbf16> to vector<4x384xbf16>
    %c104 = arith.constant 104 : index
    %c0_88 = arith.constant 0 : index
    %83 = vector.load %arg6[%c104, %c0_88] : memref<256x384xbf16, #tpu.memory_space<vmem>>, vector<4x384xbf16>
    tpu.vector_store %arg6[%c104, %c0_88], %82 {strides = array<i32>} : memref<256x384xbf16, #tpu.memory_space<vmem>>, vector<4x384xbf16>,
    %c0_89 = arith.constant 0 : index
    %c0_90 = arith.constant 0 : index
    %c72_91 = arith.constant 72 : index
    %84 = vector.load %arg2[%c0_89, %c0_90, %c72_91] : memref<1x4x640xbf16, #tpu.memory_space<vmem>>, vector<1x4x384xbf16>
    %85 = vector.shape_cast %84 : vector<1x4x384xbf16> to vector<4x384xbf16>
    %c108 = arith.constant 108 : index
    %c0_92 = arith.constant 0 : index
    %86 = vector.load %arg6[%c108, %c0_92] : memref<256x384xbf16, #tpu.memory_space<vmem>>, vector<4x384xbf16>
    tpu.vector_store %arg6[%c108, %c0_92], %85 {strides = array<i32>} : memref<256x384xbf16, #tpu.memory_space<vmem>>, vector<4x384xbf16>,
    %c0_93 = arith.constant 0 : index
    %c0_94 = arith.constant 0 : index
    %c88_95 = arith.constant 88 : index
    %87 = vector.load %arg2[%c0_93, %c0_94, %c88_95] : memref<1x4x640xbf16, #tpu.memory_space<vmem>>, vector<1x4x384xbf16>
    %88 = vector.shape_cast %87 : vector<1x4x384xbf16> to vector<4x384xbf16>
    %c112 = arith.constant 112 : index
    %c0_96 = arith.constant 0 : index
    %89 = vector.load %arg6[%c112, %c0_96] : memref<256x384xbf16, #tpu.memory_space<vmem>>, vector<4x384xbf16>
    tpu.vector_store %arg6[%c112, %c0_96], %88 {strides = array<i32>} : memref<256x384xbf16, #tpu.memory_space<vmem>>, vector<4x384xbf16>,
    %c0_97 = arith.constant 0 : index
    %c0_98 = arith.constant 0 : index
    %c89 = arith.constant 89 : index
    %90 = vector.load %arg2[%c0_97, %c0_98, %c89] : memref<1x4x640xbf16, #tpu.memory_space<vmem>>, vector<1x4x384xbf16>
    %91 = vector.shape_cast %90 : vector<1x4x384xbf16> to vector<4x384xbf16>
    %c116 = arith.constant 116 : index
    %c0_99 = arith.constant 0 : index
    %92 = vector.load %arg6[%c116, %c0_99] : memref<256x384xbf16, #tpu.memory_space<vmem>>, vector<4x384xbf16>
    tpu.vector_store %arg6[%c116, %c0_99], %91 {strides = array<i32>} : memref<256x384xbf16, #tpu.memory_space<vmem>>, vector<4x384xbf16>,
    %c0_100 = arith.constant 0 : index
    %c0_101 = arith.constant 0 : index
    %c90 = arith.constant 90 : index
    %93 = vector.load %arg2[%c0_100, %c0_101, %c90] : memref<1x4x640xbf16, #tpu.memory_space<vmem>>, vector<1x4x384xbf16>
    %94 = vector.shape_cast %93 : vector<1x4x384xbf16> to vector<4x384xbf16>
    %c120 = arith.constant 120 : index
    %c0_102 = arith.constant 0 : index
    %95 = vector.load %arg6[%c120, %c0_102] : memref<256x384xbf16, #tpu.memory_space<vmem>>, vector<4x384xbf16>
    tpu.vector_store %arg6[%c120, %c0_102], %94 {strides = array<i32>} : memref<256x384xbf16, #tpu.memory_space<vmem>>, vector<4x384xbf16>,
    %c0_103 = arith.constant 0 : index
    %c0_104 = arith.constant 0 : index
    %c91 = arith.constant 91 : index
    %96 = vector.load %arg2[%c0_103, %c0_104, %c91] : memref<1x4x640xbf16, #tpu.memory_space<vmem>>, vector<1x4x384xbf16>
    %97 = vector.shape_cast %96 : vector<1x4x384xbf16> to vector<4x384xbf16>
    %c124 = arith.constant 124 : index
    %c0_105 = arith.constant 0 : index
    %98 = vector.load %arg6[%c124, %c0_105] : memref<256x384xbf16, #tpu.memory_space<vmem>>, vector<4x384xbf16>
    tpu.vector_store %arg6[%c124, %c0_105], %97 {strides = array<i32>} : memref<256x384xbf16, #tpu.memory_space<vmem>>, vector<4x384xbf16>,
    %c0_106 = arith.constant 0 : index
    %c0_107 = arith.constant 0 : index
    %c92_108 = arith.constant 92 : index
    %99 = vector.load %arg2[%c0_106, %c0_107, %c92_108] : memref<1x4x640xbf16, #tpu.memory_space<vmem>>, vector<1x4x384xbf16>
    %100 = vector.shape_cast %99 : vector<1x4x384xbf16> to vector<4x384xbf16>
    %c128 = arith.constant 128 : index
    %c0_109 = arith.constant 0 : index
    %101 = vector.load %arg6[%c128, %c0_109] : memref<256x384xbf16, #tpu.memory_space<vmem>>, vector<4x384xbf16>
    tpu.vector_store %arg6[%c128, %c0_109], %100 {strides = array<i32>} : memref<256x384xbf16, #tpu.memory_space<vmem>>, vector<4x384xbf16>,
    %c0_110 = arith.constant 0 : index
    %c0_111 = arith.constant 0 : index
    %c93 = arith.constant 93 : index
    %102 = vector.load %arg2[%c0_110, %c0_111, %c93] : memref<1x4x640xbf16, #tpu.memory_space<vmem>>, vector<1x4x384xbf16>
    %103 = vector.shape_cast %102 : vector<1x4x384xbf16> to vector<4x384xbf16>
    %c132 = arith.constant 132 : index
    %c0_112 = arith.constant 0 : index
    %104 = vector.load %arg6[%c132, %c0_112] : memref<256x384xbf16, #tpu.memory_space<vmem>>, vector<4x384xbf16>
    tpu.vector_store %arg6[%c132, %c0_112], %103 {strides = array<i32>} : memref<256x384xbf16, #tpu.memory_space<vmem>>, vector<4x384xbf16>,
    %c0_113 = arith.constant 0 : index
    %c0_114 = arith.constant 0 : index
    %c94 = arith.constant 94 : index
    %105 = vector.load %arg2[%c0_113, %c0_114, %c94] : memref<1x4x640xbf16, #tpu.memory_space<vmem>>, vector<1x4x384xbf16>
    %106 = vector.shape_cast %105 : vector<1x4x384xbf16> to vector<4x384xbf16>
    %c136 = arith.constant 136 : index
    %c0_115 = arith.constant 0 : index
    %107 = vector.load %arg6[%c136, %c0_115] : memref<256x384xbf16, #tpu.memory_space<vmem>>, vector<4x384xbf16>
    tpu.vector_store %arg6[%c136, %c0_115], %106 {strides = array<i32>} : memref<256x384xbf16, #tpu.memory_space<vmem>>, vector<4x384xbf16>,
    %c0_116 = arith.constant 0 : index
    %c0_117 = arith.constant 0 : index
    %c110 = arith.constant 110 : index
    %108 = vector.load %arg2[%c0_116, %c0_117, %c110] : memref<1x4x640xbf16, #tpu.memory_space<vmem>>, vector<1x4x384xbf16>
    %109 = vector.shape_cast %108 : vector<1x4x384xbf16> to vector<4x384xbf16>
    %c140 = arith.constant 140 : index
    %c0_118 = arith.constant 0 : index
    %110 = vector.load %arg6[%c140, %c0_118] : memref<256x384xbf16, #tpu.memory_space<vmem>>, vector<4x384xbf16>
    tpu.vector_store %arg6[%c140, %c0_118], %109 {strides = array<i32>} : memref<256x384xbf16, #tpu.memory_space<vmem>>, vector<4x384xbf16>,
    %c0_119 = arith.constant 0 : index
    %c0_120 = arith.constant 0 : index
    %c111 = arith.constant 111 : index
    %111 = vector.load %arg2[%c0_119, %c0_120, %c111] : memref<1x4x640xbf16, #tpu.memory_space<vmem>>, vector<1x4x384xbf16>
    %112 = vector.shape_cast %111 : vector<1x4x384xbf16> to vector<4x384xbf16>
    %c144 = arith.constant 144 : index
    %c0_121 = arith.constant 0 : index
    %113 = vector.load %arg6[%c144, %c0_121] : memref<256x384xbf16, #tpu.memory_space<vmem>>, vector<4x384xbf16>
    tpu.vector_store %arg6[%c144, %c0_121], %112 {strides = array<i32>} : memref<256x384xbf16, #tpu.memory_space<vmem>>, vector<4x384xbf16>,
    %c0_122 = arith.constant 0 : index
    %c0_123 = arith.constant 0 : index
    %c112_124 = arith.constant 112 : index
    %114 = vector.load %arg2[%c0_122, %c0_123, %c112_124] : memref<1x4x640xbf16, #tpu.memory_space<vmem>>, vector<1x4x384xbf16>
    %115 = vector.shape_cast %114 : vector<1x4x384xbf16> to vector<4x384xbf16>
    %c148 = arith.constant 148 : index
    %c0_125 = arith.constant 0 : index
    %116 = vector.load %arg6[%c148, %c0_125] : memref<256x384xbf16, #tpu.memory_space<vmem>>, vector<4x384xbf16>
    tpu.vector_store %arg6[%c148, %c0_125], %115 {strides = array<i32>} : memref<256x384xbf16, #tpu.memory_space<vmem>>, vector<4x384xbf16>,
    %c0_126 = arith.constant 0 : index
    %c0_127 = arith.constant 0 : index
    %c113 = arith.constant 113 : index
    %117 = vector.load %arg2[%c0_126, %c0_127, %c113] : memref<1x4x640xbf16, #tpu.memory_space<vmem>>, vector<1x4x384xbf16>
    %118 = vector.shape_cast %117 : vector<1x4x384xbf16> to vector<4x384xbf16>
    %c152 = arith.constant 152 : index
    %c0_128 = arith.constant 0 : index
    %119 = vector.load %arg6[%c152, %c0_128] : memref<256x384xbf16, #tpu.memory_space<vmem>>, vector<4x384xbf16>
    tpu.vector_store %arg6[%c152, %c0_128], %118 {strides = array<i32>} : memref<256x384xbf16, #tpu.memory_space<vmem>>, vector<4x384xbf16>,
    %c0_129 = arith.constant 0 : index
    %c0_130 = arith.constant 0 : index
    %c114 = arith.constant 114 : index
    %120 = vector.load %arg2[%c0_129, %c0_130, %c114] : memref<1x4x640xbf16, #tpu.memory_space<vmem>>, vector<1x4x384xbf16>
    %121 = vector.shape_cast %120 : vector<1x4x384xbf16> to vector<4x384xbf16>
    %c156 = arith.constant 156 : index
    %c0_131 = arith.constant 0 : index
    %122 = vector.load %arg6[%c156, %c0_131] : memref<256x384xbf16, #tpu.memory_space<vmem>>, vector<4x384xbf16>
    tpu.vector_store %arg6[%c156, %c0_131], %121 {strides = array<i32>} : memref<256x384xbf16, #tpu.memory_space<vmem>>, vector<4x384xbf16>,
    %c0_132 = arith.constant 0 : index
    %c0_133 = arith.constant 0 : index
    %c115 = arith.constant 115 : index
    %123 = vector.load %arg2[%c0_132, %c0_133, %c115] : memref<1x4x640xbf16, #tpu.memory_space<vmem>>, vector<1x4x384xbf16>
    %124 = vector.shape_cast %123 : vector<1x4x384xbf16> to vector<4x384xbf16>
    %c160 = arith.constant 160 : index
    %c0_134 = arith.constant 0 : index
    %125 = vector.load %arg6[%c160, %c0_134] : memref<256x384xbf16, #tpu.memory_space<vmem>>, vector<4x384xbf16>
    tpu.vector_store %arg6[%c160, %c0_134], %124 {strides = array<i32>} : memref<256x384xbf16, #tpu.memory_space<vmem>>, vector<4x384xbf16>,
    %c0_135 = arith.constant 0 : index
    %c0_136 = arith.constant 0 : index
    %c116_137 = arith.constant 116 : index
    %126 = vector.load %arg2[%c0_135, %c0_136, %c116_137] : memref<1x4x640xbf16, #tpu.memory_space<vmem>>, vector<1x4x384xbf16>
    %127 = vector.shape_cast %126 : vector<1x4x384xbf16> to vector<4x384xbf16>
    %c164 = arith.constant 164 : index
    %c0_138 = arith.constant 0 : index
    %128 = vector.load %arg6[%c164, %c0_138] : memref<256x384xbf16, #tpu.memory_space<vmem>>, vector<4x384xbf16>
    tpu.vector_store %arg6[%c164, %c0_138], %127 {strides = array<i32>} : memref<256x384xbf16, #tpu.memory_space<vmem>>, vector<4x384xbf16>,
    %c0_139 = arith.constant 0 : index
    %c0_140 = arith.constant 0 : index
    %c132_141 = arith.constant 132 : index
    %129 = vector.load %arg2[%c0_139, %c0_140, %c132_141] : memref<1x4x640xbf16, #tpu.memory_space<vmem>>, vector<1x4x384xbf16>
    %130 = vector.shape_cast %129 : vector<1x4x384xbf16> to vector<4x384xbf16>
    %c168 = arith.constant 168 : index
    %c0_142 = arith.constant 0 : index
    %131 = vector.load %arg6[%c168, %c0_142] : memref<256x384xbf16, #tpu.memory_space<vmem>>, vector<4x384xbf16>
    tpu.vector_store %arg6[%c168, %c0_142], %130 {strides = array<i32>} : memref<256x384xbf16, #tpu.memory_space<vmem>>, vector<4x384xbf16>,
    %c0_143 = arith.constant 0 : index
    %c0_144 = arith.constant 0 : index
    %c133 = arith.constant 133 : index
    %132 = vector.load %arg2[%c0_143, %c0_144, %c133] : memref<1x4x640xbf16, #tpu.memory_space<vmem>>, vector<1x4x384xbf16>
    %133 = vector.shape_cast %132 : vector<1x4x384xbf16> to vector<4x384xbf16>
    %c172 = arith.constant 172 : index
    %c0_145 = arith.constant 0 : index
    %134 = vector.load %arg6[%c172, %c0_145] : memref<256x384xbf16, #tpu.memory_space<vmem>>, vector<4x384xbf16>
    tpu.vector_store %arg6[%c172, %c0_145], %133 {strides = array<i32>} : memref<256x384xbf16, #tpu.memory_space<vmem>>, vector<4x384xbf16>,
    %c0_146 = arith.constant 0 : index
    %c0_147 = arith.constant 0 : index
    %c134 = arith.constant 134 : index
    %135 = vector.load %arg2[%c0_146, %c0_147, %c134] : memref<1x4x640xbf16, #tpu.memory_space<vmem>>, vector<1x4x384xbf16>
    %136 = vector.shape_cast %135 : vector<1x4x384xbf16> to vector<4x384xbf16>
    %c176 = arith.constant 176 : index
    %c0_148 = arith.constant 0 : index
    %137 = vector.load %arg6[%c176, %c0_148] : memref<256x384xbf16, #tpu.memory_space<vmem>>, vector<4x384xbf16>
    tpu.vector_store %arg6[%c176, %c0_148], %136 {strides = array<i32>} : memref<256x384xbf16, #tpu.memory_space<vmem>>, vector<4x384xbf16>,
    %c0_149 = arith.constant 0 : index
    %c0_150 = arith.constant 0 : index
    %c135 = arith.constant 135 : index
    %138 = vector.load %arg2[%c0_149, %c0_150, %c135] : memref<1x4x640xbf16, #tpu.memory_space<vmem>>, vector<1x4x384xbf16>
    %139 = vector.shape_cast %138 : vector<1x4x384xbf16> to vector<4x384xbf16>
    %c180 = arith.constant 180 : index
    %c0_151 = arith.constant 0 : index
    %140 = vector.load %arg6[%c180, %c0_151] : memref<256x384xbf16, #tpu.memory_space<vmem>>, vector<4x384xbf16>
    tpu.vector_store %arg6[%c180, %c0_151], %139 {strides = array<i32>} : memref<256x384xbf16, #tpu.memory_space<vmem>>, vector<4x384xbf16>,
    %c0_152 = arith.constant 0 : index
    %c0_153 = arith.constant 0 : index
    %c136_154 = arith.constant 136 : index
    %141 = vector.load %arg2[%c0_152, %c0_153, %c136_154] : memref<1x4x640xbf16, #tpu.memory_space<vmem>>, vector<1x4x384xbf16>
    %142 = vector.shape_cast %141 : vector<1x4x384xbf16> to vector<4x384xbf16>
    %c184 = arith.constant 184 : index
    %c0_155 = arith.constant 0 : index
    %143 = vector.load %arg6[%c184, %c0_155] : memref<256x384xbf16, #tpu.memory_space<vmem>>, vector<4x384xbf16>
    tpu.vector_store %arg6[%c184, %c0_155], %142 {strides = array<i32>} : memref<256x384xbf16, #tpu.memory_space<vmem>>, vector<4x384xbf16>,
    %c0_156 = arith.constant 0 : index
    %c0_157 = arith.constant 0 : index
    %c137 = arith.constant 137 : index
    %144 = vector.load %arg2[%c0_156, %c0_157, %c137] : memref<1x4x640xbf16, #tpu.memory_space<vmem>>, vector<1x4x384xbf16>
    %145 = vector.shape_cast %144 : vector<1x4x384xbf16> to vector<4x384xbf16>
    %c188 = arith.constant 188 : index
    %c0_158 = arith.constant 0 : index
    %146 = vector.load %arg6[%c188, %c0_158] : memref<256x384xbf16, #tpu.memory_space<vmem>>, vector<4x384xbf16>
    tpu.vector_store %arg6[%c188, %c0_158], %145 {strides = array<i32>} : memref<256x384xbf16, #tpu.memory_space<vmem>>, vector<4x384xbf16>,
    %c0_159 = arith.constant 0 : index
    %c0_160 = arith.constant 0 : index
    %c138 = arith.constant 138 : index
    %147 = vector.load %arg2[%c0_159, %c0_160, %c138] : memref<1x4x640xbf16, #tpu.memory_space<vmem>>, vector<1x4x384xbf16>
    %148 = vector.shape_cast %147 : vector<1x4x384xbf16> to vector<4x384xbf16>
    %c192 = arith.constant 192 : index
    %c0_161 = arith.constant 0 : index
    %149 = vector.load %arg6[%c192, %c0_161] : memref<256x384xbf16, #tpu.memory_space<vmem>>, vector<4x384xbf16>
    tpu.vector_store %arg6[%c192, %c0_161], %148 {strides = array<i32>} : memref<256x384xbf16, #tpu.memory_space<vmem>>, vector<4x384xbf16>,
    %c0_162 = arith.constant 0 : index
    %c0_163 = arith.constant 0 : index
    %c0_164 = arith.constant 0 : index
    %150 = vector.load %arg3[%c0_162, %c0_163, %c0_164] : memref<1x4x384xbf16, #tpu.memory_space<vmem>>, vector<1x4x384xbf16>
    %151 = vector.shape_cast %150 : vector<1x4x384xbf16> to vector<4x384xbf16>
    %c0_165 = arith.constant 0 : index
    %c0_166 = arith.constant 0 : index
    %152 = vector.load %arg6[%c0_165, %c0_166] : memref<256x384xbf16, #tpu.memory_space<vmem>>, vector<256x384xbf16>
    %cst = arith.constant dense<0.000000e+00> : vector<4x256xf32>
    %153 = tpu.matmul %151, %152, %cst {dimension_numbers = #tpu.dot_dimension_numbers<[1], [1], [0], [0], [0, 0, 1, 0], [], []>} : vector<4x384xbf16>, vector<256x384xbf16>, vector<4x256xf32> -> vector<4x256xf32>
    %c0_167 = arith.constant 0 : index
    %c0_168 = arith.constant 0 : index
    %c0_169 = arith.constant 0 : index
    %154 = vector.load %arg4[%c0_167, %c0_168, %c0_169] : memref<1x4x256xf32, #tpu.memory_space<vmem>>, vector<1x4x256xf32>
    %155 = vector.shape_cast %154 : vector<1x4x256xf32> to vector<4x256xf32>
    %156 = arith.addf %155, %153 : vector<4x256xf32>
    %c0_170 = arith.constant 0 : index
    %c0_171 = arith.constant 0 : index
    %c0_172 = arith.constant 0 : index
    %157 = vector.load %arg4[%c0_170, %c0_171, %c0_172] : memref<1x4x256xf32, #tpu.memory_space<vmem>>, vector<1x4x256xf32>
    %158 = vector.shape_cast %157 : vector<1x4x256xf32> to vector<4x256xf32>
    %159 = vector.shape_cast %156 : vector<4x256xf32> to vector<1x4x256xf32>
    tpu.vector_store %arg4[%c0_170, %c0_171, %c0_172], %159 {strides = array<i32>} : memref<1x4x256xf32, #tpu.memory_space<vmem>>, vector<1x4x256xf32>,
    %c0_173 = arith.constant 0 : index
    %c0_174 = arith.constant 0 : index
    %c69_175 = arith.constant 69 : index
    %160 = vector.load %arg2[%c0_173, %c0_174, %c69_175] : memref<1x4x640xbf16, #tpu.memory_space<vmem>>, vector<1x4x384xbf16>
    %161 = vector.shape_cast %160 : vector<1x4x384xbf16> to vector<4x384xbf16>
    %162 = arith.extf %161 : vector<4x384xbf16> to vector<4x384xf32>
    %cst_176 = arith.constant dense<0.000000e+00> : vector<384xf32>
    %163 = vector.multi_reduction <add>, %162, %cst_176 [0] : vector<4x384xf32> to vector<384xf32>
    %164 = vector.shape_cast %163 : vector<384xf32> to vector<1x384xf32>
    %cst_177 = arith.constant 4.000000e+00 : f32
    %165 = vector.broadcast %cst_177 : f32 to vector<1x384xf32>
    %166 = arith.divf %164, %165 : vector<1x384xf32>
    %167 = tpu.iota {dimensions = array<i32: 1>} : vector<1x384xi32>
    %cst_178 = arith.constant 0.000000e+00 : f32
    %168 = vector.broadcast %cst_178 : f32 to vector<1x384xf32>
    %169 = arith.cmpf ogt, %166, %168 : vector<1x384xf32>
    %cst_179 = arith.constant 1.000000e+00 : f32
    %170 = vector.broadcast %cst_179 : f32 to vector<1x384xf32>
    %171 = arith.select %169, %166, %170 : vector<1x384xi1>, vector<1x384xf32>
    %c352_i32 = arith.constant 352 : i32
    %172 = vector.broadcast %c352_i32 : i32 to vector<1x384xi32>
    %173 = arith.cmpi slt, %167, %172 : vector<1x384xi32>
    %174 = math.log %171 : vector<1x384xf32>
    %175 = arith.mulf %166, %174 : vector<1x384xf32>
    %cst_180 = arith.constant 0.000000e+00 : f32
    %176 = vector.broadcast %cst_180 : f32 to vector<1x384xf32>
    %177 = arith.select %173, %175, %176 : vector<1x384xi1>, vector<1x384xf32>
    %c0_181 = arith.constant 0 : index
    %c0_182 = arith.constant 0 : index
    %c0_183 = arith.constant 0 : index
    %178 = vector.load %arg5[%c0_181, %c0_182, %c0_183] : memref<1x1x1xf32, #tpu.memory_space<vmem>>, vector<1x1x1xf32>
    %179 = vector.shape_cast %178 : vector<1x1x1xf32> to vector<1x1xf32>
    %cst_184 = arith.constant dense<0.000000e+00> : vector<1xf32>
    %180 = vector.multi_reduction <add>, %177, %cst_184 [1] : vector<1x384xf32> to vector<1xf32>
    %181 = vector.shape_cast %180 : vector<1xf32> to vector<1x1xf32>
    %182 = arith.addf %179, %181 : vector<1x1xf32>
    %c0_185 = arith.constant 0 : index
    %c0_186 = arith.constant 0 : index
    %c0_187 = arith.constant 0 : index
    %183 = vector.load %arg5[%c0_185, %c0_186, %c0_187] : memref<1x1x1xf32, #tpu.memory_space<vmem>>, vector<1x1x1xf32>
    %184 = vector.shape_cast %183 : vector<1x1x1xf32> to vector<1x1xf32>
    %185 = vector.shape_cast %182 : vector<1x1xf32> to vector<1x1x1xf32>
    tpu.vector_store %arg5[%c0_185, %c0_186, %c0_187], %185 {strides = array<i32>} : memref<1x1x1xf32, #tpu.memory_space<vmem>>, vector<1x1x1xf32>,
    return
  }
  func.func @transform_0(%arg0: i32, %arg1: i32) -> (i32, i32, i32) {
    %c1_i32 = arith.constant 1 : i32
    %0 = arith.muli %arg0, %c1_i32 : i32
    %1 = arith.addi %0, %arg1 : i32
    %c0_i32 = arith.constant 0 : i32
    %c0_i32_0 = arith.constant 0 : i32
    %c0_i32_1 = arith.constant 0 : i32
    return %1, %c0_i32, %c0_i32_0 : i32, i32, i32
  }
  func.func @transform_1(%arg0: i32, %arg1: i32) -> (i32, i32, i32) {
    %c1_i32 = arith.constant 1 : i32
    %0 = arith.muli %arg0, %c1_i32 : i32
    %1 = arith.addi %0, %arg1 : i32
    %c0_i32 = arith.constant 0 : i32
    %c0_i32_0 = arith.constant 0 : i32
    %c0_i32_1 = arith.constant 0 : i32
    return %1, %c0_i32, %c0_i32_0 : i32, i32, i32
  }
  func.func @transform_2(%arg0: i32, %arg1: i32) -> (i32, i32, i32) {
    %c0_i32 = arith.constant 0 : i32
    %c0_i32_0 = arith.constant 0 : i32
    %c0_i32_1 = arith.constant 0 : i32
    return %arg0, %c0_i32, %c0_i32_0 : i32, i32, i32
  }
  func.func @transform_3(%arg0: i32, %arg1: i32) -> (i32, i32, i32) {
    %c0_i32 = arith.constant 0 : i32
    %c0_i32_0 = arith.constant 0 : i32
    %c0_i32_1 = arith.constant 0 : i32
    return %arg0, %c0_i32, %c0_i32_0 : i32, i32, i32
  }
}

</mosaic_0001>

<bundles_post_ra>
// kernel: pui_seg_loss.1
= control target key start
LH: loop header
LB: loop body
LE: loop exit
PB: predicated region body
PF: predicated region fallthrough
CT: control target
= control target key end

     0   :  { %s2756_s12 = smov 0   ;;  %s2758_s13 = smov 0   ;;  %s3107_s0 = inlined_call_operand.vmem [shape: bf16[2,4,640], index: 0, kind: input, shape index: {}]   ;;  %s3108_s1 = inlined_call_operand.vmem [shape: bf16[2,4,384], index: 1, kind: input, shape index: {}]   ;;  %s3109_s2 = inlined_call_operand.vmem [shape: f32[2,4,256], index: 2, kind: output, shape index: {0}]   ;;  %s3110_s3 = inlined_call_operand.vmem [shape: f32[2,1,1], index: 3, kind: output, shape index: {1}]  }
   0x1   :  { %s2760_s14 = smov 0  }
   0x2 LB: > { %s26_s15 = sadd.s32 1, %s2682_s13  ;;  %p2445_p0 = scmp.ge.s32.totalorder %s2686_s14, 1  ;;  %s2686_s14 = sphi %s2760_s14, %s14_s14   ;;  %s2682_s13 = sphi %s2758_s13, %s3112_s13   ;;  %s2678_s12 = sphi %s2756_s12, %s3111_s12  }
   0x3   : > { %p28_p1 = scmp.ge.s32.totalorder %s26_s15, 2  ;;  %p170_p2 = scmp.lt.s32.totalorder %s2686_s14, 3 }
   0x5   : > { %s3114_s15 = smov (%p28_p1, %s26_s15), 0  ;;  %p171_p3 = pnand %p2445_p0, %p170_p2 }
   0x6   : > { %p205_p4 = scmp.lt.s32.totalorder (!%p171_p3), %s2678_s12, 1  ;;  %s2690_s20 = smov (!%p171_p3), 39  }
   0x7   : > { %174 = sbr.rel (%p171_p3) target bundleno = 545 (0x221), region = 28  ;;  %s2691_s21 = smov (!%p171_p3), 40  }
   0x8   : > { %s2692_s22 = smov (!%p171_p3), 37   ;;  %s2693_s23 = smov (!%p171_p3), 38  }
   0x9   : > { %s2694_s24 = smov (!%p171_p3), 59   ;;  %s2695_s25 = smov (!%p171_p3), 58  }
   0xa   : > { %s2696_s26 = smov (!%p171_p3), 57   ;;  %s2697_s27 = smov (!%p171_p3), 56  }
   0xb   : > { %s2698_s28 = smov (!%p171_p3), 78   ;;  %s2699_s29 = smov (!%p171_p3), 62  }
   0xc   : > { %v325_v0 = vlaneseq  ;;  %v2688_v1 = vmov 1983009808   ;;  %v2689_v3 = vmov 0   ;;  %s3116_s12 = smov (!%p205_p4, %s2678_s12), 1  ;;  %s2700_s30 = smov 61   ;;  %vm1212_vm0 = vcmask 318464  }
   0xd   : > { %v2777_v2 = vunpack.c.l.s4 %v2688_v1  ;;  %265 = vst [vmem:[#allocation2 + $0xbc] sm:$0xf] %v2689_v3  ;;  %234 = vst [vmem:[#allocation2] sm:$0xff] %v2689_v3  ;;  %s2521_s16 = smul.u32 10, %s3116_s12  ;;  %s2701_s4 = smov 60   ;;  %vm1274_vm1 = vcmask 302080  }
   0xe   : > { %235 = vst [vmem:[#allocation2 + $0x8] sm:$0xf] %v2689_v3  ;;  %236 = vst [vmem:[#allocation2 + $0xc] sm:$0xff] %v2689_v3  ;;  %v326_v4 = vshrl.u32 %v325_v0, 7  ;;  %s2702_s5 = smov 82   ;;  %s2703_s6 = smov 81  }
   0xf   : > { %237 = vst [vmem:[#allocation2 + $0x14] sm:$0xf] %v2689_v3  ;;  %238 = vst [vmem:[#allocation2 + $0x18] sm:$0xff] %v2689_v3  ;;  %v324_v5 = vunpack.c.0.s8 %v2777_v2  ;;  %s2792_s19 = scalar_lea.vmem %s3107_s0, %s2521_s16  ;;  %s2704_s7 = smov 80   ;;  %vm342_vm2 = vcmask 1043456   ;;  %vm1181_vm3 = vcmask 326656  }
  0x10   : > { %239 = vst [vmem:[#allocation2 + $0x20] sm:$0xf] %v2689_v3  ;;  %240 = vst [vmem:[#allocation2 + $0x24] sm:$0xff] %v2689_v3  ;;  %v1188_v7 = vld [vmem:[%s2792_s19] sm:$0xff]  ;;  %s2705_s8 = smov 79   ;;  %s2706_s9 = smov 101  }
  0x11   : > { %241 = vst [vmem:[#allocation2 + $0x2c] sm:$0xf] %v2689_v3  ;;  %242 = vst [vmem:[#allocation2 + $0x30] sm:$0xff] %v2689_v3  ;;  %v2787_v6 = vsub.s32 %v324_v5, %v326_v4  ;;  %v1190_v9 = vcombine.low %v1188_v7, %v1188_v7  ;;  %v1159_v10 = vcombine.high %v1188_v7, %v1188_v7  ;;  %s2707_s10 = smov 100   ;;  %s2708_s11 = smov 84   ;;  %v1774_v16 = vld [vmem:[%s2792_s19 + $0x2] sm:$0xff] }
  0x12   : > { %243 = vst [vmem:[#allocation2 + $0x38] sm:$0xf] %v2689_v3  ;;  %244 = vst [vmem:[#allocation2 + $0x3c] sm:$0xff] %v2689_v3  ;;  %s2709_s16 = smov 83   ;;  %s2710_s17 = smov 105   ;;  %v1776_v20 = vcombine.high %v1774_v16, %v1774_v16  ;;  %v2885_v28 = vld [vmem:[%s2792_s19] sm:$0xff]  ;;  %v1683_v35 = vcombine.low %v1774_v16, %v1774_v16 }
  0x13   : > { %245 = vst [vmem:[#allocation2 + $0x44] sm:$0xf] %v2689_v3  ;;  %246 = vst [vmem:[#allocation2 + $0x48] sm:$0xff] %v2689_v3  ;;  %v2796_v8 = vrot.slane %v1188_v7, %v2787_v6  ;;  %v2803_v11 = vrot.slane %v1190_v9, %v2787_v6  ;;  %v2806_v12 = vrot.slane %v1159_v10, %v2787_v6  ;;  %s2711_s18 = smov 104   ;;  %v298_v14 = vld [vmem:[%s2792_s19] sm:$0x3f]  ;;  %v2236_v31 = vunpack.c.l.bf16 %v2885_v28 }
  0x14   : > { %247 = vst [vmem:[#allocation2 + $0x50] sm:$0xf] %v2689_v3  ;;  %248 = vst [vmem:[#allocation2 + $0x54] sm:$0xff] %v2689_v3  ;;  %v300_v15 = vcombine.high %v298_v14, %v298_v14  ;;  %v2878_v25 = vrot.slane %v1776_v20, %v2787_v6  ;;  %v2881_v26 = vrot.slane %v1774_v16, %v2787_v6  ;;  %vm1243_vm4 = vcmask 310272   ;;  %s2722_s19 = smov 121  }
  0x15   : > { %249 = vst [vmem:[#allocation2 + $0x5c] sm:$0xf] %v2689_v3  ;;  %250 = vst [vmem:[#allocation2 + $0x60] sm:$0xff] %v2689_v3  ;;  %1207 = vrot.lane.b32.xlu1 %v2796_v8, %s2690_s20  ;;  %1174 = vrot.lane.b32.xlu0 %v2796_v8, %s2691_s21  ;;  %vm2244_vm5 = vcmask 1044008   ;;  %v2240_v43 = vcombine.high %v2236_v31, %v2236_v31  ;;  %v2237_v47 = vunpack.c.h.bf16 %v2885_v28  ;;  %v2899_v48 = vrot.slane %v1683_v35, %v2787_v6 }
  0x16   : > { %251 = vst [vmem:[#allocation2 + $0x68] sm:$0xf] %v2689_v3  ;;  %252 = vst [vmem:[#allocation2 + $0x6c] sm:$0xff] %v2689_v3  ;;  %vm1057_vm6 = vcmask 482304   ;;  %v2245_v56 = vsel %vm2244_vm5, %v2236_v31, 0.0  ;;  %vm2267_vm7 = vcmask 560128  }
  0x17   : > { %253 = vst [vmem:[#allocation2 + $0x74] sm:$0xf] %v2689_v3  ;;  %254 = vst [vmem:[#allocation2 + $0x78] sm:$0xff] %v2689_v3  ;;  %v2253_v59 = vsel %vm342_vm2, %v2240_v43, 0.0  ;;  %v2241_v60 = vcombine.high %v2237_v47, %v2237_v47  ;;  %v2246_v63 = vrot.slane %v2245_v56, 4  ;;  %vm1088_vm8 = vcmask 474112  }
  0x18   : > { %255 = vst [vmem:[#allocation2 + $0x80] sm:$0xf] %v2689_v3  ;;  %256 = vst [vmem:[#allocation2 + $0x84] sm:$0xff] %v2689_v3  ;;  %v2254_v4 = vrot.slane %v2253_v59, 4  ;;  %v2260_v5 = vsel %vm342_vm2, %v2237_v47, 0.0  ;;  %vm1119_vm9 = vcmask 465920  }
  0x19   : > { %257 = vst [vmem:[#allocation2 + $0x8c] sm:$0xf] %v2689_v3  ;;  %258 = vst [vmem:[#allocation2 + $0x90] sm:$0xff] %v2689_v3  ;;  %1269 = vrot.lane.b32.xlu1 %v2796_v8, %s2692_s22  ;;  %1236 = vrot.lane.b32.xlu0 %v2796_v8, %s2693_s23  ;;  %v2268_v10 = vsel %vm2267_vm7, %v2241_v60, 0.0  ;;  %vm1150_vm10 = vcmask 457728   ;;  %vm933_vm11 = vcmask 637952  }
  0x1a   : > { %259 = vst [vmem:[#allocation2 + $0x98] sm:$0xf] %v2689_v3  ;;  %260 = vst [vmem:[#allocation2 + $0x9c] sm:$0xff] %v2689_v3  ;;  %vm964_vm12 = vcmask 506880   ;;  %vm995_vm13 = vcmask 498688   ;;  %vm1026_vm14 = vcmask 490496  }
  0x1b   : > { %261 = vst [vmem:[#allocation2 + $0xa4] sm:$0xf] %v2689_v3  ;;  %262 = vst [vmem:[#allocation2 + $0xa8] sm:$0xff] %v2689_v3  ;;  %vm871_vm7 = vcmask 654336  }
  0x1c   : > { %263 = vst [vmem:[#allocation2 + $0xb0] sm:$0xf] %v2689_v3  ;;  %264 = vst [vmem:[#allocation2 + $0xb4] sm:$0xff] %v2689_v3 }
  0x1d   : > { %266 = vst [vmem:[#allocation2 + $0xc0] sm:$0xff] %v2689_v3  ;;  %267 = vst [vmem:[#allocation2 + $0xc8] sm:$0xf] %v2689_v3  ;;  %1205 = vrot.lane.b32.xlu1 %v2803_v11, %s2690_s20  ;;  %1176 = vrot.lane.b32.xlu0 %v2806_v12, %s2691_s21  ;;  %s2712_s20 = smov 103   ;;  %s2713_s21 = smov 102  }
  0x1e   : > { %268 = vst [vmem:[#allocation2 + $0xcc] sm:$0xff] %v2689_v3  ;;  %269 = vst [vmem:[#allocation2 + $0xd4] sm:$0xf] %v2689_v3 }
  0x1f   : > { %270 = vst [vmem:[#allocation2 + $0xd8] sm:$0xff] %v2689_v3  ;;  %271 = vst [vmem:[#allocation2 + $0xe0] sm:$0xf] %v2689_v3 }
  0x20   : > { %272 = vst [vmem:[#allocation2 + $0xe4] sm:$0xff] %v2689_v3  ;;  %273 = vst [vmem:[#allocation2 + $0xec] sm:$0xf] %v2689_v3 }
  0x21   : > { %274 = vst [vmem:[#allocation2 + $0xf0] sm:$0xff] %v2689_v3  ;;  %275 = vst [vmem:[#allocation2 + $0xf8] sm:$0xf] %v2689_v3  ;;  %1238 = vrot.lane.b32.xlu1 %v2806_v12, %s2693_s23  ;;  %1267 = vrot.lane.b32.xlu0 %v2803_v11, %s2692_s22  ;;  %s2714_s22 = smov 124   ;;  %s2715_s23 = smov 123  }
  0x22   : > { %276 = vst [vmem:[#allocation2 + $0xfc] sm:$0xff] %v2689_v3  ;;  %277 = vst [vmem:[#allocation2 + $0x104] sm:$0xf] %v2689_v3 }
  0x23   : > { %278 = vst [vmem:[#allocation2 + $0x108] sm:$0xff] %v2689_v3  ;;  %279 = vst [vmem:[#allocation2 + $0x110] sm:$0xf] %v2689_v3 }
  0x24   : > { %280 = vst [vmem:[#allocation2 + $0x114] sm:$0xff] %v2689_v3  ;;  %281 = vst [vmem:[#allocation2 + $0x11c] sm:$0xf] %v2689_v3 }
  0x25   : > { %282 = vst [vmem:[#allocation2 + $0x120] sm:$0xff] %v2689_v3  ;;  %283 = vst [vmem:[#allocation2 + $0x128] sm:$0xf] %v2689_v3  ;;  %1050 = vrot.lane.b32.xlu0 %v2796_v8, %s2694_s24  ;;  %1052 = vrot.lane.b32.xlu1 %v2806_v12, %s2694_s24 }
  0x26   : > { %285 = vst [vmem:[#allocation2 + $0x134] sm:$0xf] %v2689_v3  ;;  %287 = vst [vmem:[#allocation2 + $0x140] sm:$0xf] %v2689_v3 }
  0x27   : > { %289 = vst [vmem:[#allocation2 + $0x14c] sm:$0xf] %v2689_v3  ;;  %291 = vst [vmem:[#allocation2 + $0x158] sm:$0xf] %v2689_v3 }
  0x28   : > { %293 = vst [vmem:[#allocation2 + $0x164] sm:$0xf] %v2689_v3  ;;  %295 = vst [vmem:[#allocation2 + $0x170] sm:$0xf] %v2689_v3 }
  0x29   : > { %297 = vst [vmem:[#allocation2 + $0x17c] sm:$0xf] %v2689_v3  ;;  %1081 = vrot.lane.b32.xlu0 %v2803_v11, %s2695_s25  ;;  %1083 = vrot.lane.b32.xlu1 %v2796_v8, %s2695_s25  ;;  %2450 = vst.sshfl [vmem:[#allocation2] sm:$0xf pattern:$0x76325410] %v298_v14 }
  0x2a   : > { %2451 = vst.sshfl [vmem:[#allocation2 + $0x8] sm:$0x3 pattern:$0x76325410] %v300_v15  ;;  %s2716_s25 = smov 122  }
  0x2d   : > { %1112 = vrot.lane.b32.xlu0 %v2796_v8, %s2696_s26  ;;  %1114 = vrot.lane.b32.xlu1 %v2806_v12, %s2696_s26  ;;  %s2717_s26 = smov 106  }
  0x30   : > { %v2599_v13 = vld [vmem:[#allocation2 + $0x170] ss:$12 sps:$4 sm:$0xff]  }
  0x31   : > { %2503 = vmatprep.subr.bf16.mxu1 %v2599_v13  ;;  %1143 = vrot.lane.b32.xlu0 %v2803_v11, %s2697_s27  ;;  %v2604_v13 = vld [vmem:[#allocation2 + $0x158] ss:$12 sps:$4 sm:$0xff]  }
  0x32   : > { %1145 = vrot.lane.b32.xlu1 %v2796_v8, %s2697_s27  ;;  %s2718_s27 = smov 127  }
  0x35   : > { %926 = vrot.lane.b32.xlu0 %v2796_v8, %s2698_s28 }
  0x36   : > { %928 = vrot.lane.b32.xlu1 %v2806_v12, %s2698_s28  ;;  %s2719_s28 = smov 126  }
  0x39   : > { %957 = vrot.lane.b32.xlu0 %v2803_v11, %s2699_s29 }
  0x3a   : > { %959 = vrot.lane.b32.xlu1 %v2796_v8, %s2699_s29  ;;  %s2720_s29 = smov 125  }
  0x3d   : > { %988 = vrot.lane.b32.xlu0 %v2796_v8, %s2700_s30 }
  0x3e   : > { %990 = vrot.lane.b32.xlu1 %v2806_v12, %s2700_s30  ;;  %s2721_s30 = smov 118  }
  0x41   : > { %1019 = vrot.lane.b32.xlu0 %v2803_v11, %s2701_s4 }
  0x42   : > { %1021 = vrot.lane.b32.xlu1 %v2796_v8, %s2701_s4  ;;  %s2723_s4 = smov 120  }
  0x45   : > { %802 = vrot.lane.b32.xlu0 %v2796_v8, %s2702_s5 }
  0x46   : > { %804 = vrot.lane.b32.xlu1 %v2806_v12, %s2702_s5  ;;  %s2724_s5 = smov 119  }
  0x49   : > { %833 = vrot.lane.b32.xlu0 %v2803_v11, %s2703_s6 }
  0x4a   : > { %835 = vrot.lane.b32.xlu1 %v2796_v8, %s2703_s6  ;;  %s2725_s6 = smov 13  }
  0x4d   : > { %864 = vrot.lane.b32.xlu0 %v2796_v8, %s2704_s7 }
  0x4e   : > { %866 = vrot.lane.b32.xlu1 %v2806_v12, %s2704_s7  ;;  %s2726_s7 = smov 12  }
  0x51   : > { %895 = vrot.lane.b32.xlu0 %v2803_v11, %s2705_s8 }
  0x52   : > { %897 = vrot.lane.b32.xlu1 %v2796_v8, %s2705_s8  ;;  %s2727_s8 = smov 17  }
  0x55   : > { %678 = vrot.lane.b32.xlu0 %v2796_v8, %s2706_s9 }
  0x56   : > { %680 = vrot.lane.b32.xlu1 %v2806_v12, %s2706_s9  ;;  %s2728_s9 = smov 16  }
  0x59   : > { %709 = vrot.lane.b32.xlu0 %v2803_v11, %s2707_s10 }
  0x5a   : > { %711 = vrot.lane.b32.xlu1 %v2796_v8, %s2707_s10  ;;  %s2729_s10 = smov 15  }
  0x5d   : > { %740 = vrot.lane.b32.xlu0 %v2796_v8, %s2708_s11 }
  0x5e   : > { %742 = vrot.lane.b32.xlu1 %v2806_v12, %s2708_s11  ;;  %s2730_s11 = smov 14  }
  0x61   : > { %771 = vrot.lane.b32.xlu0 %v2803_v11, %s2709_s16 }
  0x62   : > { %773 = vrot.lane.b32.xlu1 %v2796_v8, %s2709_s16  ;;  %s2731_s16 = smov 36  }
  0x65   : > { %554 = vrot.lane.b32.xlu0 %v2796_v8, %s2710_s17 }
  0x66   : > { %556 = vrot.lane.b32.xlu1 %v2806_v12, %s2710_s17  ;;  %s2732_s17 = smov 35  }
  0x69   : > { %585 = vrot.lane.b32.xlu0 %v2803_v11, %s2711_s18 }
  0x6a   : > { %587 = vrot.lane.b32.xlu1 %v2796_v8, %s2711_s18  ;;  %s2733_s18 = smov 34  }
  0x6d   : > { %616 = vrot.lane.b32.xlu0 %v2796_v8, %s2712_s20 }
  0x6e   : > { %618 = vrot.lane.b32.xlu1 %v2806_v12, %s2712_s20  ;;  %s2522_s20 = smul.u32 6, %s3116_s12 }
  0x71   : > { %647 = vrot.lane.b32.xlu0 %v2803_v11, %s2713_s21 }
  0x72   : > { %649 = vrot.lane.b32.xlu1 %v2796_v8, %s2713_s21  ;;  %s2734_s21 = smov 18  }
  0x75   : > { %430 = vrot.lane.b32.xlu0 %v2796_v8, %s2714_s22 }
  0x76   : > { %432 = vrot.lane.b32.xlu1 %v2806_v12, %s2714_s22 }
  0x79   : > { %461 = vrot.lane.b32.xlu0 %v2803_v11, %s2715_s23 }
  0x7a   : > { %463 = vrot.lane.b32.xlu1 %v2796_v8, %s2715_s23 }
  0x7d   : > { %492 = vrot.lane.b32.xlu0 %v2796_v8, %s2716_s25 }
  0x7e   : > { %494 = vrot.lane.b32.xlu1 %v2806_v12, %s2716_s25 }
  0x81   : > { %523 = vrot.lane.b32.xlu0 %v2803_v11, %s2717_s26 }
  0x82   : > { %525 = vrot.lane.b32.xlu1 %v2796_v8, %s2717_s26 }
  0x85   : > { %336 = vrot.lane.b32.xlu0 %v2803_v11, %s2718_s27 }
  0x86   : > { %338 = vrot.lane.b32.xlu1 %v2796_v8, %s2718_s27  ;;  %s225_s27 = scalar_lea.vmem %s3110_s3, %s3116_s12 }
  0x87   : > { %v1208_v17 = vpop.permute.xlu1 %1207  ;;  %v1175_v18 = vpop.permute.xlu0 %1174 }
  0x88   : > { %v1210_v19 = vrot.slane %v1208_v17, 4  ;;  %v1178_v32 = vrot.slane %v1175_v18, 4 }
  0x89   : > { %368 = vrot.lane.b32.xlu0 %v2796_v8, %s2719_s28 }
  0x8a   : > { %370 = vrot.lane.b32.xlu1 %v2806_v12, %s2719_s28  ;;  %v1214_v21 = vsel %vm1212_vm0, %v1208_v17, %v1210_v19  ;;  %v2247_v17 = vadd.f32 %v2246_v63, %v2245_v56  ;;  %s2502_s28 = sshll.u32 %s3116_s12, 3 }
  0x8b   : > { %v1270_v22 = vpop.permute.xlu1 %1269  ;;  %v1237_v23 = vpop.permute.xlu0 %1236  ;;  %1218 = vst [vmem:[#allocation2 + $0xb0] sm:$0xc] %v1214_v21 }
  0x8c   : > { %v1272_v24 = vrot.slane %v1270_v22, 4  ;;  %v1240_v44 = vrot.slane %v1237_v23, 4 }
  0x8d   : > { %399 = vrot.lane.b32.xlu0 %v2803_v11, %s2720_s29 }
  0x8e   : > { %401 = vrot.lane.b32.xlu1 %v2796_v8, %s2720_s29  ;;  %v1276_v27 = vsel %vm1274_vm1, %v1270_v22, %v1272_v24 }
  0x8f   : > { %1280 = vst [vmem:[#allocation2 + $0xbc] sm:$0xc] %v1276_v27  ;;  %v1206_v29 = vpop.permute.xlu1 %1205  ;;  %v1177_v30 = vpop.permute.xlu0 %1176  ;;  %v2269_v27 = vrot.slane %v2268_v10, 4 }
  0x90   : > { %v1209_v33 = vrot.slane %v1206_v29, 4  ;;  %v1179_v34 = vrot.slane %v1177_v30, 4 }
  0x91   : > { %1791 = vrot.lane.b32.xlu0 %v2881_v26, %s2721_s30 }
  0x92   : > { %1793 = vrot.lane.b32.xlu1 %v2878_v25, %s2721_s30  ;;  %v1211_v36 = vsel %vm342_vm2, %v1209_v33, %v1210_v19  ;;  %v1180_v37 = vsel %vm342_vm2, %v1178_v32, %v1179_v34  ;;  %v1183_v38 = vsel %vm1181_vm3, %v1177_v30, %v1179_v34  ;;  %v2248_v33 = vrot.slane %v2247_v17, 2 }
  0x93   : > { %v1213_v39 = vsel %vm1212_vm0, %v1206_v29, %v1211_v36  ;;  %v1182_v40 = vsel %vm1181_vm3, %v1175_v18, %v1180_v37  ;;  %1187 = vst [vmem:[#allocation2 + $0xb0] sm:$0x3] %v1183_v38  ;;  %v1239_v41 = vpop.permute.xlu1 %1238  ;;  %v1268_v42 = vpop.permute.xlu0 %1267  ;;  %v2261_v18 = vrot.slane %v2260_v5, 4  ;;  %vm809_vm0 = vcmask 670720  }
  0x94   : > { %1217 = vst [vmem:[#allocation2 + $0xa8] sm:$0xcc] %v1213_v39  ;;  %1186 = vst [vmem:[#allocation2 + $0xa8] sm:$0x33] %v1182_v40  ;;  %v1241_v45 = vrot.slane %v1239_v41, 4  ;;  %v1271_v46 = vrot.slane %v1268_v42, 4  ;;  %v2270_v39 = vadd.f32 %v2269_v27, %v2268_v10 }
  0x95   : > { %1668 = vrot.lane.b32.xlu0 %v2881_v26, %s2716_s25  ;;  %v2262_v34 = vadd.f32 %v2261_v18, %v2260_v5 }
  0x96   : > { %1670 = vrot.lane.b32.xlu1 %v2878_v25, %s2716_s25  ;;  %v1242_v49 = vsel %vm342_vm2, %v1240_v44, %v1241_v45  ;;  %v1245_v50 = vsel %vm1243_vm4, %v1239_v41, %v1241_v45  ;;  %v1273_v51 = vsel %vm342_vm2, %v1271_v46, %v1272_v24  ;;  %v2255_v24 = vadd.f32 %v2254_v4, %v2253_v59  ;;  %s216_s25 = scalar_lea.vmem %s3108_s1, %s2522_s20 }
  0x97   : > { %1249 = vst [vmem:[#allocation2 + $0xbc] sm:$0x3] %v1245_v50  ;;  %v1244_v52 = vsel %vm1243_vm4, %v1237_v23, %v1242_v49  ;;  %v1275_v53 = vsel %vm1274_vm1, %v1268_v42, %v1273_v51  ;;  %v1051_v54 = vpop.permute.xlu0 %1050  ;;  %v1053_v55 = vpop.permute.xlu1 %1052  ;;  %v2249_v44 = vadd.f32 %v2248_v33, %v2247_v17  ;;  %v2263_v45 = vrot.slane %v2262_v34, 2 }
  0x98   : > { %1248 = vst [vmem:[#allocation2 + $0xb4] sm:$0x33] %v1244_v52  ;;  %1279 = vst [vmem:[#allocation2 + $0xb4] sm:$0xcc] %v1275_v53  ;;  %v1054_v57 = vrot.slane %v1051_v54, 4  ;;  %v1055_v58 = vrot.slane %v1053_v55, 4 }
  0x99   : > { %1698 = vrot.lane.b32.xlu0 %v2899_v48, %s2722_s19  ;;  %v2256_v38 = vrot.slane %v2255_v24, 2  ;;  %v2271_v51 = vrot.slane %v2270_v39, 2  ;;  %v2250_v56 = vrot.slane %v2249_v44, 1  ;;  %vm840_vm4 = vcmask 662528  }
  0x9a   : > { %1700 = vrot.lane.b32.xlu1 %v2881_v26, %s2722_s19  ;;  %v1056_v61 = vsel %vm342_vm2, %v1054_v57, %v1055_v58  ;;  %v1059_v62 = vsel %vm1057_vm6, %v1053_v55, %v1055_v58  ;;  %v2264_v57 = vadd.f32 %v2263_v45, %v2262_v34  ;;  %s222_s19 = scalar_lea.vmem %s3109_s2, %s2502_s28 }
  0x9b   : > { %v1058_v1 = vsel %vm1057_vm6, %v1051_v54, %v1056_v61  ;;  %1063 = vst [vmem:[#allocation2 + $0x98] sm:$0x3] %v1059_v62  ;;  %v1082_v2 = vpop.permute.xlu0 %1081  ;;  %v1084_v3 = vpop.permute.xlu1 %1083  ;;  %v2257_v50 = vadd.f32 %v2256_v38, %v2255_v24  ;;  %v2272_v62 = vadd.f32 %v2271_v51, %v2270_v39 }
  0x9c   : > { %1062 = vst [vmem:[#allocation2 + $0x90] sm:$0x33] %v1058_v1  ;;  %v1085_v7 = vrot.slane %v1082_v2, 4  ;;  %v1086_v9 = vrot.slane %v1084_v3, 4 }
  0x9d   : > { %1729 = vrot.lane.b32.xlu0 %v2881_v26, %s2723_s4  ;;  %v2258_v61 = vrot.slane %v2257_v50, 1  ;;  %v2273_v17 = vrot.slane %v2272_v62, 1 }
  0x9e   : > { %1731 = vrot.lane.b32.xlu1 %v2878_v25, %s2723_s4  ;;  %v1087_v14 = vsel %vm342_vm2, %v1085_v7, %v1086_v9  ;;  %v1090_v15 = vsel %vm1088_vm8, %v1084_v3, %v1086_v9  ;;  %v2600_v16 = vld [vmem:[#allocation2 + $0xb0] ss:$12 sps:$4 sm:$0xff]   ;;  %v2251_v7 = vadd.f32 %v2250_v56, %v2249_v44  ;;  %v2265_v9 = vrot.slane %v2264_v57, 1 }
  0x9f   : > { %v1089_v19 = vsel %vm1088_vm8, %v1082_v2, %v1087_v14  ;;  %1094 = vst [vmem:[#allocation2 + $0x98] sm:$0xc] %v1090_v15  ;;  %v1113_v20 = vpop.permute.xlu0 %1112  ;;  %v1115_v21 = vpop.permute.xlu1 %1114  ;;  %v2601_v22 = vld [vmem:[#allocation2 + $0xac] ss:$12 sps:$4 sm:$0xff]   ;;  %v2603_v23 = vld [vmem:[#allocation2 + $0xa8] ss:$12 sps:$4 sm:$0xff]   ;;  %2504 = vmatpush3.bf16.xpose.msra.mxu1 %v2600_v16 }
  0xa0   : > { %1093 = vst [vmem:[#allocation2 + $0x90] sm:$0xcc] %v1089_v19  ;;  %v1116_v29 = vrot.slane %v1113_v20, 4  ;;  %v1117_v30 = vrot.slane %v1115_v21, 4  ;;  %2146 = vmatprep.subr.bf16.mxu0 %v2601_v22  ;;  %2505 = vmatprep.subr.bf16.mxu1 %v2604_v13  ;;  %v2610_v2 = vld [vmem:[#allocation2 + $0x140] ss:$12 sps:$4 sm:$0xff]  }
  0xa1   : > { %1760 = vrot.lane.b32.xlu0 %v2899_v48, %s2724_s5  ;;  %2147 = vmatpush1.bf16.xpose.msra.mxu0 %v2603_v23  ;;  %v2943_v22 = vmul.f32 0.25, %v2251_v7  ;;  %v2266_v23 = vadd.f32 %v2265_v9, %v2264_v57  ;;  %vm902_vm8 = vcmask 646144  }
  0xa2   : > { %1762 = vrot.lane.b32.xlu1 %v2881_v26, %s2724_s5  ;;  %v1118_v31 = vsel %vm342_vm2, %v1116_v29, %v1117_v30  ;;  %v1121_v32 = vsel %vm1119_vm9, %v1115_v21, %v1117_v30  ;;  %v2274_v30 = vadd.f32 %v2273_v17, %v2272_v62 }
  0xa3   : > { %v1120_v35 = vsel %vm1119_vm9, %v1113_v20, %v1118_v31  ;;  %1125 = vst [vmem:[#allocation2 + $0xa4] sm:$0x3] %v1121_v32  ;;  %v1144_v36 = vpop.permute.xlu0 %1143  ;;  %v1469_v32 = vcombine.high %v2885_v28, %v2885_v28  ;;  %vm2284_vm15 = vcmp.gt.f32.partialorder %v2943_v22, 0.0  ;;  %vm685_vm9 = vcmask 826368  }
  0xa4   : > { %v1146_v37 = vpop.permute.xlu1 %1145  ;;  %1124 = vst [vmem:[#allocation2 + $0x9c] sm:$0x33] %v1120_v35  ;;  %v1147_v40 = vrot.slane %v1144_v36, 4  ;;  %v2954_v35 = vmul.f32 0.25, %v2266_v23  ;;  %v2288_v44 = vsel %vm2284_vm15, %v2943_v22, 1.0  ;;  %vm623_vm15 = vcmask 842752  }
  0xa5   : > { %v1148_v41 = vrot.slane %v1146_v37, 4  ;;  %1546 = vrot.lane.b32.xlu0 %v2796_v8, %s2725_s6  ;;  %2655 = vlog2.f32 %v2288_v44 }
  0xa6   : > { %1548 = vrot.lane.b32.xlu1 %v2806_v12, %s2725_s6  ;;  %vm2286_vm3 = vcmp.gt.f32.partialorder %v2954_v35, 0.0 }
  0xa7   : > { %v1149_v42 = vsel %vm342_vm2, %v1147_v40, %v1148_v41  ;;  %v1152_v43 = vsel %vm1150_vm10, %v1146_v37, %v1148_v41  ;;  %v927_v47 = vpop.permute.xlu0 %926  ;;  %v2962_v41 = vrot.slane %v1469_v32, %v2787_v6 }
  0xa8   : > { %v1151_v46 = vsel %vm1150_vm10, %v1144_v36, %v1149_v42  ;;  %1156 = vst [vmem:[#allocation2 + $0xa4] sm:$0xc] %v1152_v43  ;;  %v929_v49 = vpop.permute.xlu1 %928  ;;  %v930_v52 = vrot.slane %v927_v47, 4  ;;  %v2966_v42 = vrot.slane %v2885_v28, %v2787_v6  ;;  %v1500_v43 = vcombine.low %v2885_v28, %v2885_v28 }
  0xa9   : > { %1155 = vst [vmem:[#allocation2 + $0x9c] sm:$0xcc] %v1151_v46  ;;  %v931_v53 = vrot.slane %v929_v49, 4  ;;  %1577 = vrot.lane.b32.xlu0 %v2803_v11, %s2726_s7  ;;  %vm716_vm10 = vcmask 818176  }
  0xaa   : > { %1579 = vrot.lane.b32.xlu1 %v2796_v8, %s2726_s7  ;;  %v2982_v51 = vrot.slane %v1500_v43, %v2787_v6 }
  0xab   : > { %v932_v54 = vsel %vm342_vm2, %v930_v52, %v931_v53  ;;  %v935_v55 = vsel %vm933_vm11, %v929_v49, %v931_v53  ;;  %v958_v59 = vpop.permute.xlu0 %957  ;;  %v2290_v52 = vsel %vm2286_vm3, %v2954_v35, 1.0  ;;  %vm468_vm3 = vcmask 1006592  }
  0xac   : > { %v934_v58 = vsel %vm933_vm11, %v927_v47, %v932_v54  ;;  %939 = vst [vmem:[#allocation2 + $0x80] sm:$0x3] %v935_v55  ;;  %v960_v60 = vpop.permute.xlu1 %959  ;;  %v961_v63 = vrot.slane %v958_v59, 4  ;;  %vm747_vm11 = vcmask 687104  }
  0xad   : > { %938 = vst [vmem:[#allocation2 + $0x78] sm:$0x33] %v934_v58  ;;  %v962_v1 = vrot.slane %v960_v60, 4  ;;  %1608 = vrot.lane.b32.xlu0 %v2881_v26, %s2714_s22 }
  0xae   : > { %1610 = vrot.lane.b32.xlu1 %v2878_v25, %s2714_s22  ;;  %v2259_v25 = vadd.f32 %v2258_v61, %v2257_v50 }
  0xaf   : > { %v963_v3 = vsel %vm342_vm2, %v961_v63, %v962_v1  ;;  %v966_v4 = vsel %vm964_vm12, %v960_v60, %v962_v1  ;;  %v2605_v5 = vld [vmem:[#allocation2 + $0x98] ss:$12 sps:$4 sm:$0xff]   ;;  %v989_v13 = vpop.permute.xlu0 %988 }
  0xb0   : > { %v965_v10 = vsel %vm964_vm12, %v958_v59, %v963_v3  ;;  %970 = vst [vmem:[#allocation2 + $0x80] sm:$0xc] %v966_v4  ;;  %v991_v14 = vpop.permute.xlu1 %990  ;;  %v2606_v15 = vld [vmem:[#allocation2 + $0x94] ss:$12 sps:$4 sm:$0xff]   ;;  %v2608_v16 = vld [vmem:[#allocation2 + $0x90] ss:$12 sps:$4 sm:$0xff]   ;;  %2506 = vmatpush3.bf16.xpose.msra.mxu1 %v2605_v5 }
  0xb1   : > { %969 = vst [vmem:[#allocation2 + $0x78] sm:$0xcc] %v965_v10  ;;  %v992_v18 = vrot.slane %v989_v13, 4  ;;  %v993_v19 = vrot.slane %v991_v14, 4  ;;  %1638 = vrot.lane.b32.xlu0 %v2899_v48, %s2715_s23  ;;  %2148 = vmatprep.subr.bf16.mxu0 %v2606_v15  ;;  %vm778_vm12 = vcmask 678912  }
  0xb2   : > { %1640 = vrot.lane.b32.xlu1 %v2881_v26, %s2715_s23  ;;  %2507 = vmatprep.subr.bf16.mxu1 %v2610_v2  ;;  %v2946_v26 = vmul.f32 0.25, %v2259_v25 }
  0xb3   : > { %v994_v20 = vsel %vm342_vm2, %v992_v18, %v993_v19  ;;  %v997_v21 = vsel %vm995_vm13, %v991_v14, %v993_v19  ;;  %2149 = vmatpush1.bf16.xpose.msra.mxu0 %v2608_v16  ;;  %v1020_v27 = vpop.permute.xlu0 %1019  ;;  %v2656_v18 = vpop.eup %2655 }
  0xb4   : > { %v996_v24 = vsel %vm995_vm13, %v989_v13, %v994_v20  ;;  %1001 = vst [vmem:[#allocation2 + $0x8c] sm:$0x3] %v997_v21  ;;  %v1022_v29 = vpop.permute.xlu1 %1021  ;;  %v1023_v48 = vrot.slane %v1020_v27, 4  ;;  %vm2285_vm1 = vcmp.gt.f32.partialorder %v2946_v26, 0.0  ;;  %vm561_vm13 = vcmask 859136  }
  0xb5   : > { %1000 = vst [vmem:[#allocation2 + $0x84] sm:$0x33] %v996_v24  ;;  %v1024_v31 = vrot.slane %v1022_v29, 4  ;;  %1422 = vrot.lane.b32.xlu0 %v2796_v8, %s2727_s8 }
  0xb6   : > { %1424 = vrot.lane.b32.xlu1 %v2806_v12, %s2727_s8  ;;  %v2957_v12 = vmul.f32 0.25, %v2274_v30 }
  0xb7   : > { %v1025_v33 = vsel %vm342_vm2, %v1023_v48, %v1024_v31  ;;  %v1028_v34 = vsel %vm1026_vm14, %v1022_v29, %v1024_v31  ;;  %v803_v37 = vpop.permute.xlu0 %802  ;;  %v2296_v31 = vmul.f32 0.6931472, %v2656_v18 }
  0xb8   : > { %v1027_v36 = vsel %vm1026_vm14, %v1020_v27, %v1025_v33  ;;  %1032 = vst [vmem:[#allocation2 + $0x8c] sm:$0xc] %v1028_v34  ;;  %v805_v38 = vpop.permute.xlu1 %804  ;;  %v806_v39 = vrot.slane %v803_v37, 4  ;;  %vm2287_vm5 = vcmp.gt.f32.partialorder %v2957_v12, 0.0  ;;  %vm592_vm14 = vcmask 850944  }
  0xb9   : > { %1031 = vst [vmem:[#allocation2 + $0x84] sm:$0xcc] %v1027_v36  ;;  %v807_v40 = vrot.slane %v805_v38, 4  ;;  %1453 = vrot.lane.b32.xlu0 %v2803_v11, %s2728_s9  ;;  %v2289_v11 = vsel %vm2285_vm1, %v2946_v26, 1.0  ;;  %v2291_v56 = vsel %vm2287_vm5, %v2957_v12, 1.0  ;;  %vm437_vm1 = vcmask 1014784  }
  0xba   : > { %1455 = vrot.lane.b32.xlu1 %v2796_v8, %s2728_s9  ;;  %2657 = vlog2.f32 %v2289_v11  ;;  %vm530_vm5 = vcmask 867328  }
  0xbb   : > { %v808_v45 = vsel %vm342_vm2, %v806_v39, %v807_v40  ;;  %v811_v8 = vsel %vm809_vm0, %v805_v38, %v807_v40  ;;  %v834_v47 = vpop.permute.xlu0 %833  ;;  %2659 = vlog2.f32 %v2290_v52 }
  0xbc   : > { %v810_v46 = vsel %vm809_vm0, %v803_v37, %v808_v45  ;;  %815 = vst [vmem:[#allocation2 + $0x68] sm:$0x3] %v811_v8  ;;  %v836_v49 = vpop.permute.xlu1 %835  ;;  %v837_v28 = vrot.slane %v834_v47, 4  ;;  %2661 = vlog2.f32 %v2291_v56  ;;  %vm654_vm0 = vcmask 834560  }
  0xbd   : > { %814 = vst [vmem:[#allocation2 + $0x60] sm:$0x33] %v810_v46  ;;  %v838_v50 = vrot.slane %v836_v49, 4  ;;  %1484 = vrot.lane.b32.xlu0 %v2966_v42, %s2729_s10 }
  0xbe   : > { %1486 = vrot.lane.b32.xlu1 %v2962_v41, %s2729_s10 }
  0xbf   : > { %v839_v53 = vsel %vm342_vm2, %v837_v28, %v838_v50  ;;  %v842_v54 = vsel %vm840_vm4, %v836_v49, %v838_v50  ;;  %v2611_v55 = vld [vmem:[#allocation2 + $0x80] ss:$12 sps:$4 sm:$0xff]   ;;  %v865_v58 = vpop.permute.xlu0 %864 }
  0xc0   : > { %v841_v57 = vsel %vm840_vm4, %v834_v47, %v839_v53  ;;  %846 = vst [vmem:[#allocation2 + $0x68] sm:$0xc] %v842_v54  ;;  %v867_v59 = vpop.permute.xlu1 %866  ;;  %v2613_v60 = vld [vmem:[#allocation2 + $0x7c] ss:$12 sps:$4 sm:$0xff]   ;;  %v2615_v61 = vld [vmem:[#allocation2 + $0x78] ss:$12 sps:$4 sm:$0xff]   ;;  %2508 = vmatpush3.bf16.xpose.msra.mxu1 %v2611_v55 }
  0xc1   : > { %845 = vst [vmem:[#allocation2 + $0x60] sm:$0xcc] %v841_v57  ;;  %v868_v62 = vrot.slane %v865_v58, 4  ;;  %v869_v63 = vrot.slane %v867_v59, 4  ;;  %1515 = vrot.lane.b32.xlu0 %v2982_v51, %s2730_s11  ;;  %2150 = vmatprep.subr.bf16.mxu0 %v2613_v60  ;;  %v1805_v50 = vld [vmem:[%s216_s25] sm:$0x3f] }
  0xc2   : > { %1517 = vrot.lane.b32.xlu1 %v2966_v42, %s2730_s11  ;;  %2151 = vmatpush1.bf16.xpose.msra.mxu0 %v2615_v61  ;;  %v1871_v52 = vcombine.high %v1805_v50, %v1805_v50  ;;  %v3017_v53 = vrot.slane %v1805_v50, %v2787_v6  ;;  %vm499_vm4 = vcmask 998400  }
  0xc3   : > { %v870_v1 = vsel %vm342_vm2, %v868_v62, %v869_v63  ;;  %v873_v2 = vsel %vm871_vm7, %v867_v59, %v869_v63  ;;  %v896_v4 = vpop.permute.xlu0 %895 }
  0xc4   : > { %v872_v3 = vsel %vm871_vm7, %v865_v58, %v870_v1  ;;  %877 = vst [vmem:[#allocation2 + $0x74] sm:$0x3] %v873_v2  ;;  %v898_v5 = vpop.permute.xlu1 %897  ;;  %v899_v7 = vrot.slane %v896_v4, 4  ;;  %v3026_v58 = vrot.slane %v1871_v52, %v2787_v6  ;;  %v1886_v59 = vcombine.high %v3017_v53, %v3017_v53 }
  0xc5   : > { %876 = vst [vmem:[#allocation2 + $0x6c] sm:$0x33] %v872_v3  ;;  %v900_v9 = vrot.slane %v898_v5, 4  ;;  %1298 = vrot.lane.b32.xlu0 %v2966_v42, %s2731_s16  ;;  %vm344_vm7 = vcmask 1039360  }
  0xc6   : > { %1300 = vrot.lane.b32.xlu1 %v2962_v41, %s2731_s16  ;;  %2519 = vmatprep.mubr.bf16.mxu1 %v3026_v58 }
  0xc7   : > { %v901_v10 = vsel %vm342_vm2, %v899_v7, %v900_v9  ;;  %v904_v13 = vsel %vm902_vm8, %v898_v5, %v900_v9  ;;  %v679_v15 = vpop.permute.xlu0 %678  ;;  %v2658_v19 = vpop.eup %2657  ;;  %2178 = vmatprep.mubr.bf16.mxu0 %v1886_v59 }
  0xc8   : > { %v903_v14 = vsel %vm902_vm8, %v896_v4, %v901_v10  ;;  %908 = vst [vmem:[#allocation2 + $0x74] sm:$0xc] %v904_v13  ;;  %v681_v16 = vpop.permute.xlu1 %680  ;;  %v682_v25 = vrot.slane %v679_v15, 4  ;;  %v2660_v48 = vpop.eup %2659  ;;  %v2298_v32 = vmul.f32 0.6931472, %v2658_v19  ;;  %vm375_vm8 = vcmask 1031168  }
  0xc9   : > { %907 = vst [vmem:[#allocation2 + $0x6c] sm:$0xcc] %v903_v14  ;;  %v683_v17 = vrot.slane %v681_v16, 4  ;;  %1329 = vrot.lane.b32.xlu0 %v2982_v51, %s2732_s17  ;;  %v2662_v33 = vpop.eup %2661  ;;  %v2300_v11 = vmul.f32 0.6931472, %v2660_v48 }
  0xca   : > { %1331 = vrot.lane.b32.xlu1 %v2966_v42, %s2732_s17  ;;  %v2304_v8 = vmul.f32 %v2298_v32, %v2946_v26  ;;  %v2302_v46 = vmul.f32 0.6931472, %v2662_v33 }
  0xcb   : > { %v684_v20 = vsel %vm342_vm2, %v682_v25, %v683_v17  ;;  %v687_v21 = vsel %vm685_vm9, %v681_v16, %v683_v17  ;;  %v710_v24 = vpop.permute.xlu0 %709  ;;  %v2305_v54 = vmul.f32 %v2300_v11, %v2954_v35 }
  0xcc   : > { %v686_v23 = vsel %vm685_vm9, %v679_v15, %v684_v20  ;;  %691 = vst [vmem:[#allocation2 + $0x50] sm:$0x3] %v687_v21  ;;  %v712_v27 = vpop.permute.xlu1 %711  ;;  %v713_v29 = vrot.slane %v710_v24, 4  ;;  %v2306_v55 = vmul.f32 %v2302_v46, %v2957_v12  ;;  %vm406_vm9 = vcmask 1022976  }
  0xcd   : > { %690 = vst [vmem:[#allocation2 + $0x48] sm:$0x33] %v686_v23  ;;  %v714_v30 = vrot.slane %v712_v27, 4  ;;  %1360 = vrot.lane.b32.xlu0 %v2966_v42, %s2733_s18 }
  0xce   : > { %1362 = vrot.lane.b32.xlu1 %v2962_v41, %s2733_s18  ;;  %v2303_v41 = vmul.f32 %v2296_v31, %v2943_v22 }
  0xcf   : > { %v715_v34 = vsel %vm342_vm2, %v713_v29, %v714_v30  ;;  %v718_v36 = vsel %vm716_vm10, %v712_v27, %v714_v30  ;;  %v741_v38 = vpop.permute.xlu0 %740 }
  0xd0   : > { %v717_v37 = vsel %vm716_vm10, %v710_v24, %v715_v34  ;;  %722 = vst [vmem:[#allocation2 + $0x50] sm:$0xc] %v718_v36  ;;  %v743_v39 = vpop.permute.xlu1 %742  ;;  %v2616_v40 = vld [vmem:[#allocation2 + $0x64] ss:$12 sps:$4 sm:$0xff]   ;;  %v2618_v43 = vld [vmem:[#allocation2 + $0x60] ss:$12 sps:$4 sm:$0xff]  }
  0xd1   : > { %721 = vst [vmem:[#allocation2 + $0x48] sm:$0xcc] %v717_v37  ;;  %v744_v44 = vrot.slane %v741_v38, 4  ;;  %v745_v45 = vrot.slane %v743_v39, 4  ;;  %1391 = vrot.lane.b32.xlu0 %v2982_v51, %s2734_s21  ;;  %2152 = vmatprep.subr.bf16.mxu0 %v2616_v40  ;;  %vm1798_vm10 = vcmask 965632  }
  0xd2   : > { %1393 = vrot.lane.b32.xlu1 %v2966_v42, %s2734_s21  ;;  %2153 = vmatpush1.bf16.xpose.msra.mxu0 %v2618_v43 }
  0xd3   : > { %v746_v47 = vsel %vm342_vm2, %v744_v44, %v745_v45  ;;  %v749_v49 = vsel %vm747_vm11, %v743_v39, %v745_v45  ;;  %v772_v42 = vpop.permute.xlu0 %771 }
  0xd4   : > { %v748_v28 = vsel %vm747_vm11, %v741_v38, %v746_v47  ;;  %753 = vst [vmem:[#allocation2 + $0x5c] sm:$0x3] %v749_v49  ;;  %v774_v22 = vpop.permute.xlu1 %773  ;;  %v775_v26 = vrot.slane %v772_v42, 4  ;;  %vm1705_vm11 = vcmask 990208  }
  0xd5   : > { %752 = vst [vmem:[#allocation2 + $0x54] sm:$0x33] %v748_v28  ;;  %v776_v51 = vrot.slane %v774_v22, 4  ;;  %2311 = vrot.lane.b32.xlu0 %v2303_v41, %s2694_s24 }
  0xd6   : > { %2313 = vrot.lane.b32.xlu1 %v2304_v8, %s2694_s24 }
  0xd7   : > { %v777_v56 = vsel %vm342_vm2, %v775_v26, %v776_v51  ;;  %v780_v57 = vsel %vm778_vm12, %v774_v22, %v776_v51  ;;  %v555_v61 = vpop.permute.xlu0 %554 }
  0xd8   : > { %v779_v60 = vsel %vm778_vm12, %v772_v42, %v777_v56  ;;  %784 = vst [vmem:[#allocation2 + $0x5c] sm:$0xc] %v780_v57  ;;  %v557_v62 = vpop.permute.xlu1 %556  ;;  %v558_v35 = vrot.slane %v555_v61, 4  ;;  %vm1736_vm12 = vcmask 982016  }
  0xd9   : > { %783 = vst [vmem:[#allocation2 + $0x54] sm:$0xcc] %v779_v60  ;;  %v559_v63 = vrot.slane %v557_v62, 4  ;;  %2315 = vrot.lane.b32.xlu0 %v2305_v54, %s2694_s24 }
  0xda   : > { %2317 = vrot.lane.b32.xlu1 %v2306_v55, %s2694_s24 }
  0xdb   : > { %v560_v6 = vsel %vm342_vm2, %v558_v35, %v559_v63  ;;  %v563_v12 = vsel %vm561_vm13, %v557_v62, %v559_v63  ;;  %v586_v2 = vpop.permute.xlu0 %585 }
  0xdc   : > { %v562_v1 = vsel %vm561_vm13, %v555_v61, %v560_v6  ;;  %567 = vst [vmem:[#allocation2 + $0x38] sm:$0x3] %v563_v12  ;;  %v588_v3 = vpop.permute.xlu1 %587  ;;  %v589_v4 = vrot.slane %v586_v2, 4  ;;  %vm1767_vm13 = vcmask 973824  }
  0xdd   : > { %566 = vst [vmem:[#allocation2 + $0x30] sm:$0x33] %v562_v1  ;;  %v590_v5 = vrot.slane %v588_v3, 4 }
  0xdf   : > { %v591_v7 = vsel %vm342_vm2, %v589_v4, %v590_v5  ;;  %v594_v9 = vsel %vm592_vm14, %v588_v3, %v590_v5  ;;  %v617_v13 = vpop.permute.xlu0 %616 }
  0xe0   : > { %v593_v10 = vsel %vm592_vm14, %v586_v2, %v591_v7  ;;  %598 = vst [vmem:[#allocation2 + $0x38] sm:$0xc] %v594_v9  ;;  %v619_v14 = vpop.permute.xlu1 %618  ;;  %v2619_v15 = vld [vmem:[#allocation2 + $0x4c] ss:$12 sps:$4 sm:$0xff]   ;;  %v2621_v16 = vld [vmem:[#allocation2 + $0x48] ss:$12 sps:$4 sm:$0xff]  }
  0xe1   : > { %597 = vst [vmem:[#allocation2 + $0x30] sm:$0xcc] %v593_v10  ;;  %v620_v25 = vrot.slane %v617_v13, 4  ;;  %v621_v17 = vrot.slane %v619_v14, 4  ;;  %2154 = vmatprep.subr.bf16.mxu0 %v2619_v15  ;;  %vm1553_vm14 = vcmask 105472  }
  0xe2   : > { %2155 = vmatpush1.bf16.xpose.msra.mxu0 %v2621_v16 }
  0xe3   : > { %v622_v18 = vsel %vm342_vm2, %v620_v25, %v621_v17  ;;  %v625_v19 = vsel %vm623_vm15, %v619_v14, %v621_v17  ;;  %v648_v21 = vpop.permute.xlu0 %647 }
  0xe4   : > { %v624_v20 = vsel %vm623_vm15, %v617_v13, %v622_v18  ;;  %629 = vst [vmem:[#allocation2 + $0x44] sm:$0x3] %v625_v19  ;;  %v650_v23 = vpop.permute.xlu1 %649  ;;  %v651_v24 = vrot.slane %v648_v21, 4  ;;  %vm1584_vm15 = vcmask 97280  }
  0xe5   : > { %628 = vst [vmem:[#allocation2 + $0x3c] sm:$0x33] %v624_v20  ;;  %v652_v27 = vrot.slane %v650_v23, 4 }
  0xe7   : > { %v653_v29 = vsel %vm342_vm2, %v651_v24, %v652_v27  ;;  %v656_v30 = vsel %vm654_vm0, %v650_v23, %v652_v27  ;;  %v431_v31 = vpop.permute.xlu0 %430 }
  0xe8   : > { %v655_v48 = vsel %vm654_vm0, %v648_v21, %v653_v29  ;;  %660 = vst [vmem:[#allocation2 + $0x44] sm:$0xc] %v656_v30  ;;  %v433_v32 = vpop.permute.xlu1 %432  ;;  %v434_v33 = vrot.slane %v431_v31, 4  ;;  %vm1429_vm0 = vcmask 138240  }
  0xe9   : > { %659 = vst [vmem:[#allocation2 + $0x3c] sm:$0xcc] %v655_v48  ;;  %v435_v34 = vrot.slane %v433_v32, 4 }
  0xeb   : > { %v436_v36 = vsel %vm342_vm2, %v434_v33, %v435_v34  ;;  %v439_v37 = vsel %vm437_vm1, %v433_v32, %v435_v34  ;;  %v462_v39 = vpop.permute.xlu0 %461 }
  0xec   : > { %v438_v38 = vsel %vm437_vm1, %v431_v31, %v436_v36  ;;  %443 = vst [vmem:[#allocation2 + $0x20] sm:$0x3] %v439_v37  ;;  %v464_v40 = vpop.permute.xlu1 %463  ;;  %v465_v43 = vrot.slane %v462_v39, 4 }
  0xed   : > { %442 = vst [vmem:[#allocation2 + $0x18] sm:$0x33] %v438_v38  ;;  %v466_v44 = vrot.slane %v464_v40, 4 }
  0xef   : > { %v467_v45 = vsel %vm342_vm2, %v465_v43, %v466_v44  ;;  %v470_v41 = vsel %vm468_vm3, %v464_v40, %v466_v44  ;;  %v493_v11 = vpop.permute.xlu0 %492  ;;  %v3055_v44 = vld [vmem:[#allocation2 + $0xc0] sm:$0xff] }
  0xf0   : > { %v469_v8 = vsel %vm468_vm3, %v462_v39, %v467_v45  ;;  %474 = vst [vmem:[#allocation2 + $0x20] sm:$0xc] %v470_v41  ;;  %v495_v46 = vpop.permute.xlu1 %494  ;;  %v2622_v47 = vld [vmem:[#allocation2 + $0x34] ss:$12 sps:$4 sm:$0xff]   ;;  %v2624_v49 = vld [vmem:[#allocation2 + $0x30] ss:$12 sps:$4 sm:$0xff]   ;;  %v2498_v45 = vcombine.high %v3055_v44, %v3055_v44 }
  0xf1   : > { %473 = vst [vmem:[#allocation2 + $0x18] sm:$0xcc] %v469_v8  ;;  %v496_v28 = vrot.slane %v493_v11, 4  ;;  %v497_v42 = vrot.slane %v495_v46, 4  ;;  %2156 = vmatprep.subr.bf16.mxu0 %v2622_v47 }
  0xf2   : > { %2157 = vmatpush1.bf16.xpose.msra.mxu0 %v2624_v49 }
  0xf3   : > { %v498_v22 = vsel %vm342_vm2, %v496_v28, %v497_v42  ;;  %v501_v50 = vsel %vm499_vm4, %v495_v46, %v497_v42  ;;  %v524_v51 = vpop.permute.xlu0 %523 }
  0xf4   : > { %v500_v26 = vsel %vm499_vm4, %v493_v11, %v498_v22  ;;  %505 = vst [vmem:[#allocation2 + $0x2c] sm:$0x3] %v501_v50  ;;  %v526_v52 = vpop.permute.xlu1 %525  ;;  %v527_v54 = vrot.slane %v524_v51, 4  ;;  %v2633_v22 = vld [vmem:[#allocation2 + $0x68] ss:$12 sps:$4 sm:$0xff]  }
  0xf5   : > { %504 = vst [vmem:[#allocation2 + $0x24] sm:$0x33] %v500_v26  ;;  %v528_v55 = vrot.slane %v526_v52, 4 }
  0xf7   : > { %v529_v56 = vsel %vm342_vm2, %v527_v54, %v528_v55  ;;  %v532_v57 = vsel %vm530_vm5, %v526_v52, %v528_v55  ;;  %v337_v61 = vpop.permute.xlu0 %336  ;;  %v2497_v54 = vcombine.low %v3055_v44, %v3055_v44 }
  0xf8   : > { %v531_v59 = vsel %vm530_vm5, %v524_v51, %v529_v56  ;;  %536 = vst [vmem:[#allocation2 + $0x2c] sm:$0xc] %v532_v57  ;;  %v339_v60 = vpop.permute.xlu1 %338  ;;  %v340_v35 = vrot.slane %v337_v61, 4  ;;  %vm1305_vm5 = vcmask 293888  }
  0xf9   : > { %535 = vst [vmem:[#allocation2 + $0x24] sm:$0xcc] %v531_v59  ;;  %v341_v62 = vrot.slane %v339_v60, 4 }
  0xfb   : > { %v346_v63 = vsel %vm344_vm7, %v339_v60, %v341_v62  ;;  %v343_v6 = vsel %vm342_vm2, %v340_v35, %v341_v62  ;;  %v369_v2 = vpop.permute.xlu0 %368 }
  0xfc   : > { %350 = vst [vmem:[#allocation2 + $0x8] sm:$0xc] %v346_v63  ;;  %v345_v12 = vsel %vm344_vm7, %v337_v61, %v343_v6  ;;  %v371_v1 = vpop.permute.xlu1 %370  ;;  %v372_v4 = vrot.slane %v369_v2, 4  ;;  %vm1336_vm7 = vcmask 285696  }
  0xfd   : > { %349 = vst [vmem:[#allocation2] sm:$0xcc] %v345_v12  ;;  %v373_v3 = vrot.slane %v371_v1, 4 }
  0xff   : > { %v377_v5 = vsel %vm375_vm8, %v371_v1, %v373_v3  ;;  %v374_v7 = vsel %vm342_vm2, %v372_v4, %v373_v3  ;;  %v400_v13 = vpop.permute.xlu0 %399 }
 0x100   : > { %381 = vst [vmem:[#allocation2 + $0x14] sm:$0x3] %v377_v5  ;;  %v376_v9 = vsel %vm375_vm8, %v369_v2, %v374_v7  ;;  %v402_v10 = vpop.permute.xlu1 %401  ;;  %v2626_v14 = vld [vmem:[#allocation2 + $0x1c] ss:$12 sps:$4 sm:$0xff]   ;;  %v2628_v15 = vld [vmem:[#allocation2 + $0x18] ss:$12 sps:$4 sm:$0xff]  }
 0x101   : > { %380 = vst [vmem:[#allocation2 + $0xc] sm:$0x33] %v376_v9  ;;  %v404_v16 = vrot.slane %v402_v10, 4  ;;  %v403_v25 = vrot.slane %v400_v13, 4  ;;  %2158 = vmatprep.subr.bf16.mxu0 %v2626_v14  ;;  %vm1367_vm8 = vcmask 277504  }
 0x102   : > { %2159 = vmatpush1.bf16.xpose.msra.mxu0 %v2628_v15 }
 0x103   : > { %v408_v17 = vsel %vm406_vm9, %v402_v10, %v404_v16  ;;  %v405_v18 = vsel %vm342_vm2, %v403_v25, %v404_v16  ;;  %v1792_v21 = vpop.permute.xlu0 %1791 }
 0x104   : > { %412 = vst [vmem:[#allocation2 + $0x14] sm:$0xc] %v408_v17  ;;  %v407_v19 = vsel %vm406_vm9, %v400_v13, %v405_v18  ;;  %v1794_v20 = vpop.permute.xlu1 %1793  ;;  %v1795_v24 = vrot.slane %v1792_v21, 4  ;;  %v2635_v18 = vld [vmem:[#allocation2 + $0x50] ss:$12 sps:$4 sm:$0xff]   ;;  %vm1398_vm9 = vcmask 146432  }
 0x105   : > { %411 = vst [vmem:[#allocation2 + $0xc] sm:$0xcc] %v407_v19  ;;  %v1796_v23 = vrot.slane %v1794_v20, 4 }
 0x107   : > { %v1800_v27 = vsel %vm1798_vm10, %v1794_v20, %v1796_v23  ;;  %v1797_v29 = vsel %vm342_vm2, %v1795_v24, %v1796_v23  ;;  %v1669_v31 = vpop.permute.xlu0 %1668 }
 0x108   : > { %1804 = vst [vmem:[#allocation2 + $0x128] sm:$0x3] %v1800_v27  ;;  %v1799_v30 = vsel %vm1798_vm10, %v1792_v21, %v1797_v29  ;;  %v1671_v48 = vpop.permute.xlu1 %1670  ;;  %v1672_v33 = vrot.slane %v1669_v31, 4  ;;  %vm2330_vm10 = vcmask 1040384  }
 0x109   : > { %1803 = vst [vmem:[#allocation2 + $0x120] sm:$0x33] %v1799_v30  ;;  %v1673_v32 = vrot.slane %v1671_v48, 4 }
 0x10b   : > { %v1676_v34 = vsel %vm499_vm4, %v1671_v48, %v1673_v32  ;;  %v1674_v36 = vsel %vm342_vm2, %v1672_v33, %v1673_v32  ;;  %v1699_v39 = vpop.permute.xlu0 %1698 }
 0x10c   : > { %1680 = vst [vmem:[#allocation2 + $0x110] sm:$0x3] %v1676_v34  ;;  %v1675_v37 = vsel %vm499_vm4, %v1669_v31, %v1674_v36  ;;  %v1701_v38 = vpop.permute.xlu1 %1700  ;;  %v2629_v40 = vld [vmem:[#allocation2 + $0x4] ss:$12 sps:$4 sm:$0xff]   ;;  %v2631_v43 = vld [vmem:[#allocation2] ss:$12 sps:$4 sm:$0xff]  }
 0x10d   : > { %1679 = vst [vmem:[#allocation2 + $0x108] sm:$0x33] %v1675_v37  ;;  %v1703_v41 = vrot.slane %v1701_v38, 4  ;;  %v1702_v8 = vrot.slane %v1699_v39, 4  ;;  %2160 = vmatprep.subr.bf16.mxu0 %v2629_v40  ;;  %vm1522_vm4 = vcmask 113664  }
 0x10e   : > { %2161 = vmatpush1.bf16.xpose.msra.mxu0 %v2631_v43 }
 0x10f   : > { %v1707_v11 = vsel %vm1705_vm11, %v1701_v38, %v1703_v41  ;;  %v1704_v46 = vsel %vm342_vm2, %v1702_v8, %v1703_v41  ;;  %v2632_v47 = vld [vmem:[#allocation2 + $0x128] ss:$12 sps:$4 sm:$0xff]   ;;  %v1730_v42 = vpop.permute.xlu0 %1729  ;;  %2162 = vmatprep.subr.bf16.mxu0 %v2498_v45 }
 0x110   : > { %1711 = vst [vmem:[#allocation2 + $0x110] sm:$0xc] %v1707_v11  ;;  %v1706_v49 = vsel %vm1705_vm11, %v1699_v39, %v1704_v46  ;;  %v1732_v28 = vpop.permute.xlu1 %1731  ;;  %v1733_v26 = vrot.slane %v1730_v42, 4  ;;  %2509 = vmatprep.subr.bf16.mxu1 %v2632_v47  ;;  %v1854_v24 = vld [vmem:[#allocation2 + $0x120] sm:$0xff] }
 0x111   : > { %1710 = vst [vmem:[#allocation2 + $0x108] sm:$0xcc] %v1706_v49  ;;  %v1734_v50 = vrot.slane %v1732_v28, 4  ;;  %2510 = vmatpush3.bf16.xpose.msra.mxu1 %v2633_v22  ;;  %v2489_v32 = vcombine.high %v1854_v24, %v3055_v44  ;;  %v2488_v49 = vcombine.low %v1854_v24, %v3055_v44 }
 0x113   : > { %v1738_v51 = vsel %vm1736_vm12, %v1732_v28, %v1734_v50  ;;  %v1735_v52 = vsel %vm342_vm2, %v1733_v26, %v1734_v50  ;;  %v1761_v57 = vpop.permute.xlu0 %1760 }
 0x114   : > { %1742 = vst [vmem:[#allocation2 + $0x11c] sm:$0x3] %v1738_v51  ;;  %v1737_v55 = vsel %vm1736_vm12, %v1730_v42, %v1735_v52  ;;  %v1763_v56 = vpop.permute.xlu1 %1762  ;;  %v1764_v60 = vrot.slane %v1761_v57, 4 }
 0x115   : > { %1741 = vst [vmem:[#allocation2 + $0x114] sm:$0x33] %v1737_v55  ;;  %v1765_v59 = vrot.slane %v1763_v56, 4 }
 0x116   : > { %2163 = vmatpush2.bf16.xpose.msra.mxu0 %v2497_v54 }
 0x117   : > { %v1769_v61 = vsel %vm1767_vm13, %v1763_v56, %v1765_v59  ;;  %v1766_v62 = vsel %vm342_vm2, %v1764_v60, %v1765_v59  ;;  %v1547_v6 = vpop.permute.xlu0 %1546  ;;  %2164 = vmatprep.subr.bf16.mxu0 %v2498_v45 }
 0x118   : > { %1773 = vst [vmem:[#allocation2 + $0x11c] sm:$0xc] %v1769_v61  ;;  %v1768_v35 = vsel %vm1767_vm13, %v1761_v57, %v1766_v62  ;;  %v1549_v63 = vpop.permute.xlu1 %1548  ;;  %v1550_v1 = vrot.slane %v1547_v6, 4 }
 0x119   : > { %1772 = vst [vmem:[#allocation2 + $0x114] sm:$0xcc] %v1768_v35  ;;  %v1551_v12 = vrot.slane %v1549_v63, 4 }
 0x11b   : > { %v1555_v2 = vsel %vm1553_vm14, %v1549_v63, %v1551_v12  ;;  %v1552_v3 = vsel %vm342_vm2, %v1550_v1, %v1551_v12  ;;  %v1578_v7 = vpop.permute.xlu0 %1577 }
 0x11c   : > { %1559 = vst [vmem:[#allocation2 + $0xf8] sm:$0x3] %v1555_v2  ;;  %v1554_v4 = vsel %vm1553_vm14, %v1547_v6, %v1552_v3  ;;  %v1580_v5 = vpop.permute.xlu1 %1579  ;;  %v1581_v10 = vrot.slane %v1578_v7, 4 }
 0x11d   : > { %1558 = vst [vmem:[#allocation2 + $0xf0] sm:$0x33] %v1554_v4  ;;  %v1582_v9 = vrot.slane %v1580_v5, 4 }
 0x11e   : > { %2165 = vmatpush2.bf16.xpose.msra.mxu0 %v2497_v54 }
 0x11f   : > { %v1586_v13 = vsel %vm1584_vm15, %v1580_v5, %v1582_v9  ;;  %v1583_v14 = vsel %vm342_vm2, %v1581_v10, %v1582_v9  ;;  %v2634_v15 = vld [vmem:[#allocation2 + $0x110] ss:$12 sps:$4 sm:$0xff]   ;;  %v1609_v17 = vpop.permute.xlu0 %1608  ;;  %2166 = vmatprep.subr.bf16.mxu0 %v2498_v45 }
 0x120   : > { %1590 = vst [vmem:[#allocation2 + $0xf8] sm:$0xc] %v1586_v13  ;;  %v1585_v16 = vsel %vm1584_vm15, %v1578_v7, %v1583_v14  ;;  %v1611_v25 = vpop.permute.xlu1 %1610  ;;  %v1612_v20 = vrot.slane %v1609_v17, 4  ;;  %2511 = vmatprep.subr.bf16.mxu1 %v2634_v15  ;;  %v2636_v28 = vld [vmem:[#allocation2 + $0x10c] ss:$12 sps:$4 sm:$0xff]  }
 0x121   : > { %1589 = vst [vmem:[#allocation2 + $0xf0] sm:$0xcc] %v1585_v16  ;;  %v1613_v19 = vrot.slane %v1611_v25, 4  ;;  %2512 = vmatpush3.bf16.xpose.msra.mxu1 %v2635_v18  ;;  %v2640_v63 = vld [vmem:[#allocation2 + $0x108] ss:$12 sps:$4 sm:$0xff]  }
 0x123   : > { %v1616_v21 = vsel %vm437_vm1, %v1611_v25, %v1613_v19  ;;  %v1614_v23 = vsel %vm342_vm2, %v1612_v20, %v1613_v19  ;;  %v1639_v30 = vpop.permute.xlu0 %1638 }
 0x124   : > { %1620 = vst [vmem:[#allocation2 + $0x104] sm:$0x3] %v1616_v21  ;;  %v1615_v27 = vsel %vm437_vm1, %v1609_v17, %v1614_v23  ;;  %v1641_v29 = vpop.permute.xlu1 %1640  ;;  %v1642_v31 = vrot.slane %v1639_v30, 4  ;;  %vm1460_vm1 = vcmask 130048  }
 0x125   : > { %1619 = vst [vmem:[#allocation2 + $0xfc] sm:$0x33] %v1615_v27  ;;  %v1643_v48 = vrot.slane %v1641_v29, 4 }
 0x126   : > { %2167 = vmatpush2.bf16.xpose.msra.mxu0 %v2497_v54  ;;  %v2639_v54 = vld [vmem:[#allocation2 + $0x38] ss:$12 sps:$4 sm:$0xff]  }
 0x127   : > { %v1646_v33 = vsel %vm468_vm3, %v1641_v29, %v1643_v48  ;;  %v1644_v34 = vsel %vm342_vm2, %v1642_v31, %v1643_v48  ;;  %v1423_v38 = vpop.permute.xlu0 %1422  ;;  %2168 = vmatprep.subr.bf16.mxu0 %v2489_v32  ;;  %v2647_v29 = vld [vmem:[#allocation2 + $0x20] ss:$12 sps:$4 sm:$0xff]  }
 0x128   : > { %1650 = vst [vmem:[#allocation2 + $0x104] sm:$0xc] %v1646_v33  ;;  %v1645_v36 = vsel %vm468_vm3, %v1639_v30, %v1644_v34  ;;  %v1425_v37 = vpop.permute.xlu1 %1424  ;;  %v1426_v40 = vrot.slane %v1423_v38, 4  ;;  %vm1491_vm3 = vcmask 121856   ;;  %v2281_v33 = vand.u32 127, %v325_v0 }
 0x129   : > { %1649 = vst [vmem:[#allocation2 + $0xfc] sm:$0xcc] %v1645_v36  ;;  %v1427_v39 = vrot.slane %v1425_v37, 4 }
 0x12b   : > { %v1431_v43 = vsel %vm1429_vm0, %v1425_v37, %v1427_v39  ;;  %v1428_v45 = vsel %vm342_vm2, %v1426_v40, %v1427_v39  ;;  %v1454_v11 = vpop.permute.xlu0 %1453 }
 0x12c   : > { %1435 = vst [vmem:[#allocation2 + $0xe0] sm:$0x3] %v1431_v43  ;;  %v1430_v41 = vsel %vm1429_vm0, %v1423_v38, %v1428_v45  ;;  %v1456_v8 = vpop.permute.xlu1 %1455  ;;  %v1457_v47 = vrot.slane %v1454_v11, 4 }
 0x12d   : > { %1434 = vst [vmem:[#allocation2 + $0xd8] sm:$0x33] %v1430_v41  ;;  %v1458_v46 = vrot.slane %v1456_v8, 4  ;;  %v2283_v41 = vadd.s32 256, %v2281_v33 }
 0x12e   : > { %2169 = vmatpush2.bf16.xpose.msra.mxu0 %v2488_v49 }
 0x12f   : > { %v1462_v42 = vsel %vm1460_vm1, %v1456_v8, %v1458_v46  ;;  %v1459_v22 = vsel %vm342_vm2, %v1457_v47, %v1458_v46  ;;  %v2638_v50 = vld [vmem:[#allocation2 + $0xf8] ss:$12 sps:$4 sm:$0xff]   ;;  %v1485_v52 = vpop.permute.xlu0 %1484  ;;  %2170 = vmatprep.subr.bf16.mxu0 %v2636_v28  ;;  %vm2294_vm11 = vcmp.lt.s32.totalorder %v2283_v41, 352 }
 0x130   : > { %1466 = vst [vmem:[#allocation2 + $0xe0] sm:$0xc] %v1462_v42  ;;  %v1461_v26 = vsel %vm1460_vm1, %v1454_v11, %v1459_v22  ;;  %v1487_v51 = vpop.permute.xlu1 %1486  ;;  %v1488_v56 = vrot.slane %v1485_v52, 4  ;;  %2513 = vmatprep.subr.bf16.mxu1 %v2638_v50  ;;  %v2641_v6 = vld [vmem:[#allocation2 + $0xf4] ss:$12 sps:$4 sm:$0xff]  }
 0x131   : > { %1465 = vst [vmem:[#allocation2 + $0xd8] sm:$0xcc] %v1461_v26  ;;  %v1489_v55 = vrot.slane %v1487_v51, 4  ;;  %2514 = vmatpush3.bf16.xpose.msra.mxu1 %v2639_v54  ;;  %v2643_v17 = vld [vmem:[#allocation2 + $0xf0] ss:$12 sps:$4 sm:$0xff]  }
 0x132   : > { %v2652_v50 = vld [vmem:[#allocation2 + $0x8] ss:$12 sps:$4 sm:$0xff]  }
 0x133   : > { %v1493_v57 = vsel %vm1491_vm3, %v1487_v51, %v1489_v55  ;;  %v1490_v44 = vsel %vm342_vm2, %v1488_v56, %v1489_v55  ;;  %v1516_v61 = vpop.permute.xlu0 %1515 }
 0x134   : > { %1497 = vst [vmem:[#allocation2 + $0xec] sm:$0x3] %v1493_v57  ;;  %v1492_v59 = vsel %vm1491_vm3, %v1485_v52, %v1490_v44  ;;  %v1518_v60 = vpop.permute.xlu1 %1517  ;;  %v1519_v35 = vrot.slane %v1516_v61, 4 }
 0x135   : > { %1496 = vst [vmem:[#allocation2 + $0xe4] sm:$0x33] %v1492_v59  ;;  %v1520_v62 = vrot.slane %v1518_v60, 4  ;;  %v2735_v59 = vmov 0.0  }
 0x136   : > { %2171 = vmatpush2.bf16.xpose.msra.mxu0 %v2640_v63 }
 0x137   : > { %v1524_v12 = vsel %vm1522_vm4, %v1518_v60, %v1520_v62  ;;  %v1521_v1 = vsel %vm342_vm2, %v1519_v35, %v1520_v62  ;;  %v1299_v4 = vpop.permute.xlu0 %1298  ;;  %2172 = vmatprep.subr.bf16.mxu0 %v2641_v6 }
 0x138   : > { %1528 = vst [vmem:[#allocation2 + $0xec] sm:$0xc] %v1524_v12  ;;  %v1523_v2 = vsel %vm1522_vm4, %v1516_v61, %v1521_v1  ;;  %v1301_v3 = vpop.permute.xlu1 %1300  ;;  %v1302_v7 = vrot.slane %v1299_v4, 4 }
 0x139   : > { %1527 = vst [vmem:[#allocation2 + $0xe4] sm:$0xcc] %v1523_v2  ;;  %v1303_v5 = vrot.slane %v1301_v3, 4 }
 0x13b   : > { %v1307_v9 = vsel %vm1305_vm5, %v1301_v3, %v1303_v5  ;;  %v1304_v10 = vsel %vm342_vm2, %v1302_v7, %v1303_v5  ;;  %v1330_v15 = vpop.permute.xlu0 %1329 }
 0x13c   : > { %1311 = vst [vmem:[#allocation2 + $0xc8] sm:$0x3] %v1307_v9  ;;  %v1306_v13 = vsel %vm1305_vm5, %v1299_v4, %v1304_v10  ;;  %v1332_v14 = vpop.permute.xlu1 %1331  ;;  %v1333_v25 = vrot.slane %v1330_v15, 4 }
 0x13d   : > { %1310 = vst [vmem:[#allocation2 + $0xc0] sm:$0x33] %v1306_v13  ;;  %v1334_v16 = vrot.slane %v1332_v14, 4 }
 0x13e   : > { %2173 = vmatpush2.bf16.xpose.msra.mxu0 %v2643_v17 }
 0x13f   : > { %v1338_v18 = vsel %vm1336_vm7, %v1332_v14, %v1334_v16  ;;  %v1335_v19 = vsel %vm342_vm2, %v1333_v25, %v1334_v16  ;;  %v2644_v20 = vld [vmem:[#allocation2 + $0xe0] ss:$12 sps:$4 sm:$0xff]   ;;  %v1361_v24 = vpop.permute.xlu0 %1360 }
 0x140   : > { %1342 = vst [vmem:[#allocation2 + $0xc8] sm:$0xc] %v1338_v18  ;;  %v1337_v21 = vsel %vm1336_vm7, %v1330_v15, %v1335_v19  ;;  %v1363_v23 = vpop.permute.xlu1 %1362  ;;  %v2645_v27 = vld [vmem:[#allocation2 + $0xdc] ss:$12 sps:$4 sm:$0xff]   ;;  %v1364_v48 = vrot.slane %v1361_v24, 4  ;;  %2515 = vmatprep.subr.bf16.mxu1 %v2644_v20 }
 0x141   : > { %1341 = vst [vmem:[#allocation2 + $0xc0] sm:$0xcc] %v1337_v21  ;;  %v1365_v30 = vrot.slane %v1363_v23, 4  ;;  %2174 = vmatprep.subr.bf16.mxu0 %v2645_v27  ;;  %2516 = vmatpush3.bf16.xpose.msra.mxu1 %v2647_v29  ;;  %v2648_v40 = vld [vmem:[#allocation2 + $0xd8] ss:$12 sps:$4 sm:$0xff]  }
 0x143   : > { %v1369_v31 = vsel %vm1367_vm8, %v1363_v23, %v1365_v30  ;;  %v1366_v32 = vsel %vm342_vm2, %v1364_v48, %v1365_v30  ;;  %v1392_v37 = vpop.permute.xlu0 %1391 }
 0x144   : > { %1373 = vst [vmem:[#allocation2 + $0xd4] sm:$0x3] %v1369_v31  ;;  %v1368_v34 = vsel %vm1367_vm8, %v1361_v24, %v1366_v32  ;;  %v1394_v36 = vpop.permute.xlu1 %1393  ;;  %v1395_v39 = vrot.slane %v1392_v37, 4 }
 0x145   : > { %1372 = vst [vmem:[#allocation2 + $0xcc] sm:$0x33] %v1368_v34  ;;  %v1396_v38 = vrot.slane %v1394_v36, 4 }
 0x146   : > { %2175 = vmatpush2.bf16.xpose.msra.mxu0 %v2648_v40 }
 0x147   : > { %v1400_v43 = vsel %vm1398_vm9, %v1394_v36, %v1396_v38  ;;  %v1397_v45 = vsel %vm342_vm2, %v1395_v39, %v1396_v38  ;;  %v2312_v11 = vpop.permute.xlu0 %2311  ;;  %vm232_vm2 = vcmask 0  }
 0x148   : > { %1404 = vst [vmem:[#allocation2 + $0xd4] sm:$0xc] %v1400_v43  ;;  %v1399_v8 = vsel %vm1398_vm9, %v1392_v37, %v1397_v45  ;;  %v2314_v46 = vpop.permute.xlu1 %2313  ;;  %233 = vst.msk [vmem:[%s225_s27] sm:$0x1] %vm232_vm2, %v2735_v59 }
 0x149   : > { %1403 = vst [vmem:[#allocation2 + $0xcc] sm:$0xcc] %v1399_v8  ;;  %v2320_v0 = vsel %vm1057_vm6, %v2312_v11, %v2314_v46 }
 0x14a   : > { %v2331_v47 = vsel %vm2330_vm10, %v2320_v0, 0.0 }
 0x14b   : > { %v2316_v49 = vpop.permute.xlu0 %2315 }
 0x14c   : > { %v2318_v28 = vpop.permute.xlu1 %2317  ;;  %v2321_v42 = vsel %vm1057_vm6, %v2314_v46, %v2316_v49 }
 0x14d   : > { %v2322_v22 = vsel %vm1057_vm6, %v2316_v49, %v2318_v28  ;;  %v2332_v26 = vsel %vm2330_vm10, %v2321_v42, 0.0 }
 0x14e   : > { %v2328_v51 = vsel %vm2294_vm11, %v2322_v22, 0.0  ;;  %v2333_v54 = vadd.f32 %v2332_v26, %v2331_v47 }
 0x14f   : > { %v2649_v52 = vld [vmem:[#allocation2 + $0xc8] ss:$12 sps:$4 sm:$0xff]   ;;  %v2334_v55 = vsel %vm2330_vm10, %v2328_v51, 0.0  ;;  %v2329_v60 = vld [vmem:[%s225_s27] sm:$0x1] }
 0x150   : > { %v2650_v56 = vld [vmem:[#allocation2 + $0xc4] ss:$12 sps:$4 sm:$0xff]   ;;  %v2653_v57 = vld [vmem:[#allocation2 + $0xc0] ss:$12 sps:$4 sm:$0xff]   ;;  %2517 = vmatprep.subr.bf16.mxu1 %v2649_v52  ;;  %v2335_v44 = vadd.f32 %v2334_v55, %v2333_v54 }
 0x151   : > { %2176 = vmatprep.subr.bf16.mxu0 %v2650_v56  ;;  %2518 = vmatpush3.bf16.xpose.msra.mxu1 %v2652_v50 }
 0x152   : > { %2177 = vmatpush2.bf16.xpose.msra.mxu0 %v2653_v57  ;;  %2336 = vadd.xlane.f32.xlu0 %v2335_v44 }
 0x158   : > { %2520 = vmatmul.mubr.bf16.vlgmr.msra.gmra.mxu1 %v3026_v58 }
 0x159   : > { %2179 = vmatmul.mubr.bf16.vlgmr.msra.gmra.mxu0 %v3017_v53 }
 0x1db   : > { %v2337_v61 = vpop.xlane.xlu0 %2336 }
 0x1dc   : > { %v2338_v62 = vadd.f32 %v2337_v61, %v2329_v60 }
 0x1de   : > { %2340 = vst.msk [vmem:[%s225_s27] sm:$0x1] %vm232_vm2, %v2338_v62 }
 0x218   : > { %v2221_v35 = vpop.f32.mrf.mxu1 }
 0x219   : > { %v2180_v63 = vpop.f32.mrf.mxu0 }
 0x21a   : > { %v2223_v6 = vpop.f32.mrf.mxu1  ;;  %v2222_v1 = vadd.f32 %v2221_v35, %v2180_v63 }
 0x21b   : > { %v2182_v12 = vpop.f32.mrf.mxu0 }
 0x21c   : > { %v2224_v58 = vadd.f32 %v2223_v6, %v2182_v12  ;;  %v2225_v2 = vpop.f32.mrf.mxu1 }
 0x21d   : > { %v2184_v53 = vpop.f32.mrf.mxu0 }
 0x21e   : > { %v2231_v3 = vcombine.low %v2222_v1, %v2224_v58  ;;  %v2226_v4 = vpop.f32.mrf.mxu1 }
 0x21f   : > { %v2185_v5 = vpop.f32.mrf.mxu0 }
 0x220   : > { %2234 = vst [vmem:[%s222_s19] sm:$0xff] %v2231_v3 }
 0x221 PF: > { %s14_s14 = sadd.s32 1, %s2686_s14   ;;  %s3111_s12 = smov %s2682_s13 }
 0x222   : > { %p11_p5 = scmp.ge.s32.totalorder %s14_s14, 4   ;;  %s3112_s13 = smov %s3114_s15 }
 0x224   :  { %13 = sbr.rel (!%p11_p5) target bundleno = 2 (0x2), region = 77 }

</bundles_post_ra>
